<compile_context>
chip_gen: v5e
topology: v5e:2x2
jax: 0.10.0
libtpu: 0.0.40
codegen_flags: <defaults>
</compile_context>

<pallas_src>
import jax
import jax.numpy as jnp
from jax import lax
from jax.experimental import pallas as pl
from jax.experimental.pallas import tpu as pltpu


def _round_up(a, b):
    return (a + b - 1) // b * b


# ----------------------------- Pallas kernels --------------------------------------- #

def _stats_kernel(x_ref, xbar0_ref, g_ref, s_ref):
    """Per-core accumulation of centered colsum and centered Gram (X - xbar0)^T (X - xbar0)."""
    i = pl.program_id(1)

    @pl.when(i == 0)
    def _():
        g_ref[...] = jnp.zeros_like(g_ref)
        s_ref[...] = jnp.zeros_like(s_ref)

    xc = x_ref[...] - xbar0_ref[...]                               # (TM, Cin)
    g_ref[...] += lax.dot_general(
        xc, xc, dimension_numbers=(((0,), (0,)), ((), ())),
        preferred_element_type=jnp.float32)[None]                  # (1, Cin, Cin)
    s_ref[...] += jnp.sum(xc, axis=0, keepdims=True)[None]         # (1, 1, Cin)


def _deconv_bn_relu_kernel(x_ref, w_ref, shift_ref, o_ref):
    """One M tile: (TM, Cin) @ (Cin, Ccols) (BN scale pre-folded into W), + shift, ReLU."""
    y = jnp.dot(x_ref[...], w_ref[...], preferred_element_type=jnp.float32)
    o_ref[...] = jnp.maximum(y + shift_ref[...], 0.0).astype(o_ref.dtype)


# ----------------------------- Wrapper ----------------------------------------------- #

def upsampling_deconv_block(x, w, b, gamma, beta, eps=1e-5,
                            out_dtype=jnp.float32, layout="NCDHW"):
    """x: (N, Cin, D, H, W); w: (Cin, Cout, 2, 2, 2) (PyTorch ConvTranspose3d layout).

    Returns (N, Cout, 2D, 2H, 2W) for layout="NCDHW" (matches the PyTorch module in
    training mode).  layout="KPLANAR" returns the kernel-native
    (N, D, H, W, 2, 2, 2, Cout) tensor with no relayout pass — preferred when the
    consumer can fuse the interleave into its own input BlockSpec.

    NOTE: the ConvTranspose bias `b` cancels exactly under batch-stat BatchNorm and is
    ignored here; this is not valid for eval-mode (running-stats) BatchNorm.
    """
    del b  # cancels under training-mode BN
    N, Cin, D, H, W = x.shape
    Cout = w.shape[1]
    M = N * D * H * W
    ccols = _round_up(8 * Cout, 128)                    # lane-dense output width

    # ---- chip-aware VMEM budget & M-tile size ----------------------------------------
    try:
        vmem_cap = int(getattr(pltpu.get_tpu_info(), "vmem_capacity_bytes"))
    except Exception:
        vmem_cap = 64 * 1024 * 1024                     # conservative fallback (v7x per-core)
    vmem_limit = min(vmem_cap * 3 // 4, 96 * 1024 * 1024)

    lane_cin = _round_up(Cin, 128)                      # X tiles are lane-padded in VMEM
    budget = int(vmem_limit * 0.6)                      # headroom for Mosaic scratch
    fixed = 2 * 4 * _round_up(Cin, 8) * ccols + (2 << 20)
    per_row = 2 * 4 * (lane_cin + ccols)                # double-buffered X + out tiles
    tm = int(max(256, min((budget - fixed) // per_row, 4096)))
    tm -= tm % 256
    tm = min(tm, _round_up(max(8, (M + 1) // 2), 8))    # >=2 tiles so both cores get work
    tm = max(8, tm - tm % 8)

    mt = (M + tm - 1) // tm
    if mt % 2:
        mt += 1                                         # even tile count for the 2-way split
    m_pad = mt * tm
    mt_half = mt // 2
    npad = m_pad - M

    # ---- glue: channels-last flatten of X (X is 1/8 the size of the output) -----------
    # TODO(synk): for Cin < 128 a transposed (Cin-on-sublane, spatial-on-lane) formulation
    # would avoid this XLA transpose entirely and make X loads lane-dense.
    x_flat = jnp.transpose(x, (0, 2, 3, 4, 1)).reshape(M, Cin).astype(jnp.float32)
    if npad:
        x_flat = jnp.pad(x_flat, ((0, npad), (0, 0)))

    # Cheap mean estimate for the shifted-data Gram (any shift is exact; a close one
    # avoids catastrophic cancellation). Reads only the first tile of X.
    xbar0 = jnp.mean(x_flat[: min(tm, M)], axis=0, keepdims=True)   # (1, Cin)

    # Merged weights: W_cat[ci, k*Cout + co] = w[ci, co, kd, kh, kw], k = kd*4 + kh*2 + kw.
    w_stack = jnp.transpose(w, (2, 3, 4, 0, 1)).reshape(8, Cin, Cout).astype(jnp.float32)
    w_cat = jnp.transpose(w_stack, (1, 0, 2)).reshape(Cin, 8 * Cout)

    # ---- pass 1: Pallas reduce for BN statistics (centered colsum + Gram) -------------
    g_parts, s_parts = pl.pallas_call(
        _stats_kernel,
        out_shape=(jax.ShapeDtypeStruct((2, Cin, Cin), jnp.float32),
                   jax.ShapeDtypeStruct((2, 1, Cin), jnp.float32)),
        grid=(2, mt_half),
        in_specs=[pl.BlockSpec((tm, Cin), lambda c, i: (c * mt_half + i, 0)),
                  pl.BlockSpec((1, Cin), lambda c, i: (0, 0))],
        out_specs=(pl.BlockSpec((1, Cin, Cin), lambda c, i: (c, 0, 0)),
                   pl.BlockSpec((1, 1, Cin), lambda c, i: (c, 0, 0))),
        compiler_params=pltpu.CompilerParams(
            dimension_semantics=("parallel", "arbitrary"),
            vmem_limit_bytes=vmem_limit),
        cost_estimate=pl.CostEstimate(
            flops=2 * m_pad * Cin * Cin,
            transcendentals=0,
            bytes_accessed=4 * (m_pad * Cin + 2 * Cin * Cin + 3 * Cin)),
    )(x_flat, xbar0)

    # ---- analytic BatchNorm statistics (parameter-sized math, done once) --------------
    m_total = jnp.float32(M)
    xb0 = xbar0[0]                                                # (Cin,)
    s_c = jnp.sum(s_parts, axis=0)[0] + npad * xb0                # sum_real (x - xbar0)
    g_c = jnp.sum(g_parts, axis=0) - npad * jnp.outer(xb0, xb0)   # centered about xbar0
    delta = s_c / m_total
    xbar = xb0 + delta                                            # true per-channel mean of X
    gc = g_c - m_total * jnp.outer(delta, delta)                  # Gram centered about xbar

    mean_k = jnp.einsum("c,kco->ko", xbar, w_stack)               # (8, Cout) per-offset means
    mu = jnp.mean(mean_k, axis=0)                                 # (Cout,) overall mean
    within = jnp.einsum("kac,ab,kbc->kc", w_stack, gc, w_stack)   # (8, Cout)
    var = within.sum(0) / (8.0 * m_total) + jnp.mean((mean_k - mu[None, :]) ** 2, axis=0)
    var = jnp.maximum(var, 0.0)

    inv = gamma.astype(jnp.float32) * lax.rsqrt(var + eps)        # (Cout,)
    shift = beta.astype(jnp.float32) - mu * inv                   # (Cout,)

    # Fold BN scale into the merged weights; kernel keeps only add + relu + cast.
    w_cat_scaled = w_cat * jnp.tile(inv, 8)[None, :]              # k-major, cout-minor cols
    shift_cat = jnp.tile(shift, 8)[None, :]
    if ccols != 8 * Cout:
        w_cat_scaled = jnp.pad(w_cat_scaled, ((0, 0), (0, ccols - 8 * Cout)))
        shift_cat = jnp.pad(shift_cat, ((0, 0), (0, ccols - 8 * Cout)))

    # ---- pass 2: fused deconv-matmul + BN shift + ReLU, tiled & pipelined over M ------
    o = pl.pallas_call(
        _deconv_bn_relu_kernel,
        out_shape=jax.ShapeDtypeStruct((m_pad, ccols), out_dtype),
        grid=(mt,),
        in_specs=[
            pl.BlockSpec((tm, Cin), lambda i: (i, 0)),
            pl.BlockSpec((Cin, ccols), lambda i: (0, 0)),
            pl.BlockSpec((1, ccols), lambda i: (0, 0)),
        ],
        out_specs=pl.BlockSpec((tm, ccols), lambda i: (i, 0)),
        compiler_params=pltpu.CompilerParams(
            dimension_semantics=("parallel",),
            vmem_limit_bytes=vmem_limit),
        cost_estimate=pl.CostEstimate(
            flops=2 * m_pad * Cin * ccols,
            transcendentals=0,
            bytes_accessed=4 * (m_pad * Cin + Cin * ccols)
                           + jnp.dtype(out_dtype).itemsize * m_pad * ccols),
    )(x_flat, w_cat_scaled, shift_cat)

    # ---- glue: restore PyTorch NCDHW layout --------------------------------------------
    if npad or ccols != 8 * Cout:
        o = o[:M, : 8 * Cout]
    o = o.reshape(N, D, H, W, 2, 2, 2, Cout)
    if layout == "KPLANAR":
        return o
    # TODO(synk): this full-output interleave transpose adds two HBM passes over the
    # result; fuse it into the consumer's input BlockSpec (or use layout="KPLANAR").
    o = jnp.transpose(o, (0, 7, 1, 4, 2, 5, 3, 6))                # (N,Cout,D,kd,H,kh,W,kw)
    return o.reshape(N, Cout, 2 * D, 2 * H, 2 * W)


# ----------------------------- Demo / self-check ------------------------------------- #

if __name__ == "__main__":
    key = jax.random.PRNGKey(0)
    k1, k2, k3, k4, k5 = jax.random.split(key, 5)

    # Small decoder-ish shapes; 8*Cout = 128 -> fully lane-dense kernel output.
    N, Cin, Cout, D, H, W = 2, 16, 16, 8, 8, 8
    x = jax.random.normal(k1, (N, Cin, D, H, W), jnp.float32)
    w = jax.random.normal(k2, (Cin, Cout, 2, 2, 2), jnp.float32) * 0.1
    b = jax.random.normal(k3, (Cout,), jnp.float32) * 0.1
    gamma = 1.0 + 0.1 * jax.random.normal(k4, (Cout,), jnp.float32)
    beta = 0.1 * jax.random.normal(k5, (Cout,), jnp.float32)

    fn = jax.jit(upsampling_deconv_block)
    out = jax.block_until_ready(fn(x, w, b, gamma, beta))

    # Pure-JAX reference (same math as the PyTorch module in training mode).
    y = jnp.einsum("ncdhw,cokpq->nodkhpwq", x, w)
    y = y.reshape(N, Cout, 2 * D, 2 * H, 2 * W) + b[None, :, None, None, None]
    mean = jnp.mean(y, axis=(0, 2, 3, 4), keepdims=True)
    var = jnp.mean((y - mean) ** 2, axis=(0, 2, 3, 4), keepdims=True)
    y = (y - mean) * lax.rsqrt(var + 1e-5)
    y = y * gamma[None, :, None, None, None] + beta[None, :, None, None, None]
    ref = jnp.maximum(y, 0.0)

    assert out.shape == (N, Cout, 2 * D, 2 * H, 2 * W)
    err = float(jnp.max(jnp.abs(out - ref)))
    assert jnp.allclose(out, ref, atol=1e-3, rtol=1e-3), err
    print("KERNEL_OK")
</pallas_src>

<mosaic_0001>
module attributes {stable_mosaic.version = 11 : i64} {
  func.func @_stats_kernel(%arg0: i32, %arg1: i32, %arg2: memref<512x16xf32, #tpu.memory_space<vmem>>, %arg3: memref<1x16xf32, #tpu.memory_space<vmem>>, %arg4: memref<1x16x16xf32, #tpu.memory_space<vmem>>, %arg5: memref<1x1x16xf32, #tpu.memory_space<vmem>>) attributes {dimension_semantics = [#tpu.dimension_semantics<parallel>, #tpu.dimension_semantics<arbitrary>], iteration_bounds = array<i64: 2, 1>, scalar_prefetch = 0 : i64, scratch_operands = 0 : i64, tpu.core_type = #tpu.core_type<tc>, window_params = [{transform_indices = @transform_0, window_bounds = array<i64: 512, 16>}, {pipeline_mode = #tpu.pipeline_mode<synchronous>, transform_indices = @transform_1, window_bounds = array<i64: 1, 16>}, {transform_indices = @transform_2, window_bounds = array<i64: 1, 16, 16>}, {transform_indices = @transform_3, window_bounds = array<i64: 1, 1, 16>}]} {
    %c0_i32 = arith.constant 0 : i32
    %0 = arith.cmpi eq, %arg1, %c0_i32 : i32
    %1 = arith.extui %0 : i1 to i32
    %c0_i32_0 = arith.constant 0 : i32
    %2 = arith.cmpi ne, %1, %c0_i32_0 : i32
    scf.if %2 {
      %cst_17 = arith.constant 0.000000e+00 : f32
      %18 = vector.broadcast %cst_17 : f32 to vector<1x16x16xf32>
      %c0_18 = arith.constant 0 : index
      %c0_19 = arith.constant 0 : index
      %c0_20 = arith.constant 0 : index
      %19 = vector.load %arg4[%c0_18, %c0_19, %c0_20] : memref<1x16x16xf32, #tpu.memory_space<vmem>>, vector<1x16x16xf32>
      tpu.vector_store %arg4[%c0_18, %c0_19, %c0_20], %18 {strides = array<i32>} : memref<1x16x16xf32, #tpu.memory_space<vmem>>, vector<1x16x16xf32>,
      %cst_21 = arith.constant 0.000000e+00 : f32
      %20 = vector.broadcast %cst_21 : f32 to vector<1x1x16xf32>
      %c0_22 = arith.constant 0 : index
      %c0_23 = arith.constant 0 : index
      %c0_24 = arith.constant 0 : index
      %21 = vector.load %arg5[%c0_22, %c0_23, %c0_24] : memref<1x1x16xf32, #tpu.memory_space<vmem>>, vector<1x1x16xf32>
      tpu.vector_store %arg5[%c0_22, %c0_23, %c0_24], %20 {strides = array<i32>} : memref<1x1x16xf32, #tpu.memory_space<vmem>>, vector<1x1x16xf32>,
    } else {
    }
    %c0 = arith.constant 0 : index
    %c0_1 = arith.constant 0 : index
    %3 = vector.load %arg2[%c0, %c0_1] : memref<512x16xf32, #tpu.memory_space<vmem>>, vector<512x16xf32>
    %c0_2 = arith.constant 0 : index
    %c0_3 = arith.constant 0 : index
    %4 = vector.load %arg3[%c0_2, %c0_3] : memref<1x16xf32, #tpu.memory_space<vmem>>, vector<1x16xf32>
    %5 = vector.broadcast %4 : vector<1x16xf32> to vector<512x16xf32>
    %6 = arith.subf %3, %5 : vector<512x16xf32>
    %c0_4 = arith.constant 0 : index
    %c0_5 = arith.constant 0 : index
    %c0_6 = arith.constant 0 : index
    %7 = vector.load %arg4[%c0_4, %c0_5, %c0_6] : memref<1x16x16xf32, #tpu.memory_space<vmem>>, vector<1x16x16xf32>
    %cst = arith.constant dense<0.000000e+00> : vector<16x16xf32>
    %8 = tpu.matmul %6, %6, %cst {dimension_numbers = #tpu.dot_dimension_numbers<[0], [0], [1], [1], [0, 1, 1, 1], [], []>} : vector<512x16xf32>, vector<512x16xf32>, vector<16x16xf32> -> vector<16x16xf32>
    %9 = vector.shape_cast %8 : vector<16x16xf32> to vector<1x16x16xf32>
    %10 = arith.addf %7, %9 : vector<1x16x16xf32>
    %c0_7 = arith.constant 0 : index
    %c0_8 = arith.constant 0 : index
    %c0_9 = arith.constant 0 : index
    %11 = vector.load %arg4[%c0_7, %c0_8, %c0_9] : memref<1x16x16xf32, #tpu.memory_space<vmem>>, vector<1x16x16xf32>
    tpu.vector_store %arg4[%c0_7, %c0_8, %c0_9], %10 {strides = array<i32>} : memref<1x16x16xf32, #tpu.memory_space<vmem>>, vector<1x16x16xf32>,
    %c0_10 = arith.constant 0 : index
    %c0_11 = arith.constant 0 : index
    %c0_12 = arith.constant 0 : index
    %12 = vector.load %arg5[%c0_10, %c0_11, %c0_12] : memref<1x1x16xf32, #tpu.memory_space<vmem>>, vector<1x1x16xf32>
    %cst_13 = arith.constant dense<0.000000e+00> : vector<16xf32>
    %13 = vector.multi_reduction <add>, %6, %cst_13 [0] : vector<512x16xf32> to vector<16xf32>
    %14 = vector.shape_cast %13 : vector<16xf32> to vector<1x16xf32>
    %15 = vector.shape_cast %14 : vector<1x16xf32> to vector<1x1x16xf32>
    %16 = arith.addf %12, %15 : vector<1x1x16xf32>
    %c0_14 = arith.constant 0 : index
    %c0_15 = arith.constant 0 : index
    %c0_16 = arith.constant 0 : index
    %17 = vector.load %arg5[%c0_14, %c0_15, %c0_16] : memref<1x1x16xf32, #tpu.memory_space<vmem>>, vector<1x1x16xf32>
    tpu.vector_store %arg5[%c0_14, %c0_15, %c0_16], %16 {strides = array<i32>} : memref<1x1x16xf32, #tpu.memory_space<vmem>>, vector<1x1x16xf32>,
    return
  }
  func.func @transform_0(%arg0: i32, %arg1: i32) -> (i32, i32) {
    %c1_i32 = arith.constant 1 : i32
    %0 = arith.muli %arg0, %c1_i32 : i32
    %1 = arith.addi %0, %arg1 : i32
    %c0_i32 = arith.constant 0 : i32
    %c0_i32_0 = arith.constant 0 : i32
    return %1, %c0_i32 : i32, i32
  }
  func.func @transform_1(%arg0: i32, %arg1: i32) -> (i32, i32) {
    %c0_i32 = arith.constant 0 : i32
    %c0_i32_0 = arith.constant 0 : i32
    %c0_i32_1 = arith.constant 0 : i32
    return %c0_i32, %c0_i32_0 : i32, i32
  }
  func.func @transform_2(%arg0: i32, %arg1: i32) -> (i32, i32, i32) {
    %c0_i32 = arith.constant 0 : i32
    %c0_i32_0 = arith.constant 0 : i32
    %c0_i32_1 = arith.constant 0 : i32
    return %arg0, %c0_i32, %c0_i32_0 : i32, i32, i32
  }
  func.func @transform_3(%arg0: i32, %arg1: i32) -> (i32, i32, i32) {
    %c0_i32 = arith.constant 0 : i32
    %c0_i32_0 = arith.constant 0 : i32
    %c0_i32_1 = arith.constant 0 : i32
    return %arg0, %c0_i32, %c0_i32_0 : i32, i32, i32
  }
}

module attributes {stable_mosaic.version = 11 : i64} {
  func.func @_deconv_bn_relu_kernel(%arg0: i32, %arg1: memref<512x16xf32, #tpu.memory_space<vmem>>, %arg2: memref<16x128xf32, #tpu.memory_space<vmem>>, %arg3: memref<1x128xf32, #tpu.memory_space<vmem>>, %arg4: memref<512x128xf32, #tpu.memory_space<vmem>>) attributes {dimension_semantics = [#tpu.dimension_semantics<parallel>], iteration_bounds = array<i64: 2>, scalar_prefetch = 0 : i64, scratch_operands = 0 : i64, tpu.core_type = #tpu.core_type<tc>, window_params = [{transform_indices = @transform_0, window_bounds = array<i64: 512, 16>}, {pipeline_mode = #tpu.pipeline_mode<synchronous>, transform_indices = @transform_1, window_bounds = array<i64: 16, 128>}, {pipeline_mode = #tpu.pipeline_mode<synchronous>, transform_indices = @transform_2, window_bounds = array<i64: 1, 128>}, {transform_indices = @transform_3, window_bounds = array<i64: 512, 128>}]} {
    %c0 = arith.constant 0 : index
    %c0_0 = arith.constant 0 : index
    %0 = vector.load %arg1[%c0, %c0_0] : memref<512x16xf32, #tpu.memory_space<vmem>>, vector<512x16xf32>
    %c0_1 = arith.constant 0 : index
    %c0_2 = arith.constant 0 : index
    %1 = vector.load %arg2[%c0_1, %c0_2] : memref<16x128xf32, #tpu.memory_space<vmem>>, vector<16x128xf32>
    %cst = arith.constant dense<0.000000e+00> : vector<512x128xf32>
    %2 = tpu.matmul %0, %1, %cst {dimension_numbers = #tpu.dot_dimension_numbers<[1], [0], [0], [1], [0, 0, 1, 1], [], []>} : vector<512x16xf32>, vector<16x128xf32>, vector<512x128xf32> -> vector<512x128xf32>
    %c0_3 = arith.constant 0 : index
    %c0_4 = arith.constant 0 : index
    %3 = vector.load %arg3[%c0_3, %c0_4] : memref<1x128xf32, #tpu.memory_space<vmem>>, vector<1x128xf32>
    %4 = vector.broadcast %3 : vector<1x128xf32> to vector<512x128xf32>
    %5 = arith.addf %2, %4 : vector<512x128xf32>
    %cst_5 = arith.constant 0.000000e+00 : f32
    %6 = vector.broadcast %cst_5 : f32 to vector<512x128xf32>
    %7 = arith.maximumf %5, %6 : vector<512x128xf32>
    %c0_6 = arith.constant 0 : index
    %c0_7 = arith.constant 0 : index
    %8 = vector.load %arg4[%c0_6, %c0_7] : memref<512x128xf32, #tpu.memory_space<vmem>>, vector<512x128xf32>
    tpu.vector_store %arg4[%c0_6, %c0_7], %7 {strides = array<i32>} : memref<512x128xf32, #tpu.memory_space<vmem>>, vector<512x128xf32>,
    return
  }
  func.func @transform_0(%arg0: i32) -> (i32, i32) {
    %c0_i32 = arith.constant 0 : i32
    %c0_i32_0 = arith.constant 0 : i32
    return %arg0, %c0_i32 : i32, i32
  }
  func.func @transform_1(%arg0: i32) -> (i32, i32) {
    %c0_i32 = arith.constant 0 : i32
    %c0_i32_0 = arith.constant 0 : i32
    %c0_i32_1 = arith.constant 0 : i32
    return %c0_i32, %c0_i32_0 : i32, i32
  }
  func.func @transform_2(%arg0: i32) -> (i32, i32) {
    %c0_i32 = arith.constant 0 : i32
    %c0_i32_0 = arith.constant 0 : i32
    %c0_i32_1 = arith.constant 0 : i32
    return %c0_i32, %c0_i32_0 : i32, i32
  }
  func.func @transform_3(%arg0: i32) -> (i32, i32) {
    %c0_i32 = arith.constant 0 : i32
    %c0_i32_0 = arith.constant 0 : i32
    return %arg0, %c0_i32 : i32, i32
  }
}

</mosaic_0001>

<bundles_post_ra>
// kernel: tile.18
= control target key start
LH: loop header
LB: loop body
LE: loop exit
PB: predicated region body
PF: predicated region fallthrough
CT: control target
= control target key end

     0   :  { %s22_s0 = inlined_call_operand.vmem [shape: f32[16], index: 0, kind: input, shape index: {}]   ;;  %s23_s1 = inlined_call_operand.vmem [shape: f32[8,16], index: 1, kind: output, shape index: {}]  }
   0x1   :  { %v4_v0 = vld [vmem:[%s22_s0] ss:$0 sm:$0xff] }
   0x2   :  { %5 = vst [vmem:[%s23_s1] sm:$0xff] %v4_v0 }

// kernel: mul.47
= control target key start
LH: loop header
LB: loop body
LE: loop exit
PB: predicated region body
PF: predicated region fallthrough
CT: control target
= control target key end

     0   :  { %s67_s10 = smov 112   ;;  %s68_s11 = smov 80   ;;  %vm3_vm0 = vcmask 130048   ;;  %vm9_vm1 = vcmask 1048448   ;;  %vm15_vm2 = vcmask 917248   ;;  %vm21_vm3 = vcmask 786048   ;;  %s111_s0 = inlined_call_operand.vmem [shape: f32[8,16], index: 0, kind: input, shape index: {}]   ;;  %s112_s1 = inlined_call_operand.vmem [shape: f32[128], index: 1, kind: output, shape index: {}]  }
   0x1   :  { %v53_v0 = vld [vmem:[%s111_s0 + $0x7] sm:$0x1]   ;;  %v55_v1 = vld [vmem:[%s111_s0 + $0x5] sm:$0x1]   ;;  %v57_v2 = vld [vmem:[%s111_s0 + $0x3] sm:$0x1]  }
   0x2   :  { %7 = vrot.lane.b32.xlu0 %v53_v0, %s67_s10  ;;  %19 = vrot.lane.b32.xlu1 %v55_v1, %s68_s11  ;;  %s69_s14 = smov 48   ;;  %v54_v3 = vld [vmem:[%s111_s0 + $0x6] sm:$0x1]   ;;  %v56_v4 = vld [vmem:[%s111_s0 + $0x4] sm:$0x1]   ;;  %s70_s21 = smov 96  }
   0x3   :  { %31 = vrot.lane.b32.xlu2 %v57_v2, %s69_s14  ;;  %v58_v5 = vld [vmem:[%s111_s0 + $0x2] sm:$0x1]   ;;  %s71_s22 = smov 64   ;;  %s72_s23 = smov 32   ;;  %v59_v6 = vld [vmem:[%s111_s0 + $0x1] sm:$0x1]  }
   0x4   :  { %s73_s26 = smov 16   ;;  %v2_v7 = vld [vmem:[%s111_s0] sm:$0x1]   ;;  %vm27_vm4 = vcmask 654848   ;;  %vm33_vm5 = vcmask 523648   ;;  %vm39_vm6 = vcmask 392448  }
   0x5   :  { %4 = vst.msk [vmem:[#allocation0] sm:$0x1] %vm3_vm0, %v2_v7   ;;  %vm45_vm7 = vcmask 261248  }
   0xa   :  { %13 = vrot.lane.b32.xlu0 %v54_v3, %s70_s21  ;;  %25 = vrot.lane.b32.xlu1 %v56_v4, %s71_s22 }
   0xb   :  { %37 = vrot.lane.b32.xlu2 %v58_v5, %s72_s23 }
  0x12   :  { %43 = vrot.lane.b32.xlu0 %v59_v6, %s73_s26 }
  0x5d   :  { %v32_v8 = vpop.permute.xlu2 %31  }
  0x65   :  { %v38_v9 = vpop.permute.xlu2 %37  }
  0x74   :  { %v8_v10 = vpop.permute.xlu0 %7   ;;  %v20_v11 = vpop.permute.xlu1 %19  }
  0x75   :  { %10 = vst.msk [vmem:[#allocation0] sm:$0x1] %vm9_vm1, %v8_v10  }
  0x7c   :  { %v14_v12 = vpop.permute.xlu0 %13   ;;  %v26_v13 = vpop.permute.xlu1 %25  }
  0x7d   :  { %16 = vst.msk [vmem:[#allocation0] sm:$0x1] %vm15_vm2, %v14_v12  }
  0x7e   :  { %22 = vst.msk [vmem:[#allocation0] sm:$0x1] %vm21_vm3, %v20_v11  }
  0x7f   :  { %28 = vst.msk [vmem:[#allocation0] sm:$0x1] %vm27_vm4, %v26_v13  }
  0x80   :  { %34 = vst.msk [vmem:[#allocation0] sm:$0x1] %vm33_vm5, %v32_v8  }
  0x81   :  { %40 = vst.msk [vmem:[#allocation0] sm:$0x1] %vm39_vm6, %v38_v9  }
  0x84   :  { %v44_v14 = vpop.permute.xlu0 %43  }
  0x85   :  { %46 = vst.msk [vmem:[#allocation0] sm:$0x1] %vm45_vm7, %v44_v14  }
  0x8c   :  { %v49_v15 = vld [vmem:[#allocation0] sm:$0x1] }
  0x8d   :  { %52 = vst [vmem:[%s112_s1] sm:$0x1] %v49_v15 }

// kernel: tile.19
= control target key start
LH: loop header
LB: loop body
LE: loop exit
PB: predicated region body
PF: predicated region fallthrough
CT: control target
= control target key end

     0   :  { %s67_s10 = smov 112   ;;  %s68_s11 = smov 80   ;;  %vm3_vm0 = vcmask 130048   ;;  %vm9_vm1 = vcmask 1048448   ;;  %vm15_vm2 = vcmask 917248   ;;  %vm21_vm3 = vcmask 786048   ;;  %s111_s0 = inlined_call_operand.vmem [shape: f32[8,16], index: 0, kind: input, shape index: {}]   ;;  %s112_s1 = inlined_call_operand.vmem [shape: f32[1,128], index: 1, kind: output, shape index: {}]  }
   0x1   :  { %v53_v0 = vld [vmem:[%s111_s0 + $0x7] sm:$0x1]   ;;  %v55_v1 = vld [vmem:[%s111_s0 + $0x5] sm:$0x1]   ;;  %v57_v2 = vld [vmem:[%s111_s0 + $0x3] sm:$0x1]  }
   0x2   :  { %7 = vrot.lane.b32.xlu0 %v53_v0, %s67_s10  ;;  %19 = vrot.lane.b32.xlu1 %v55_v1, %s68_s11  ;;  %s69_s14 = smov 48   ;;  %v54_v3 = vld [vmem:[%s111_s0 + $0x6] sm:$0x1]   ;;  %v56_v4 = vld [vmem:[%s111_s0 + $0x4] sm:$0x1]   ;;  %s70_s21 = smov 96  }
   0x3   :  { %31 = vrot.lane.b32.xlu2 %v57_v2, %s69_s14  ;;  %v58_v5 = vld [vmem:[%s111_s0 + $0x2] sm:$0x1]   ;;  %s71_s22 = smov 64   ;;  %s72_s23 = smov 32   ;;  %v59_v6 = vld [vmem:[%s111_s0 + $0x1] sm:$0x1]  }
   0x4   :  { %s73_s26 = smov 16   ;;  %v2_v7 = vld [vmem:[%s111_s0] sm:$0x1]   ;;  %vm27_vm4 = vcmask 654848   ;;  %vm33_vm5 = vcmask 523648   ;;  %vm39_vm6 = vcmask 392448  }
   0x5   :  { %4 = vst.msk [vmem:[#allocation0] sm:$0x1] %vm3_vm0, %v2_v7   ;;  %vm45_vm7 = vcmask 261248  }
   0xa   :  { %13 = vrot.lane.b32.xlu0 %v54_v3, %s70_s21  ;;  %25 = vrot.lane.b32.xlu1 %v56_v4, %s71_s22 }
   0xb   :  { %37 = vrot.lane.b32.xlu2 %v58_v5, %s72_s23 }
  0x12   :  { %43 = vrot.lane.b32.xlu0 %v59_v6, %s73_s26 }
  0x5d   :  { %v32_v8 = vpop.permute.xlu2 %31  }
  0x65   :  { %v38_v9 = vpop.permute.xlu2 %37  }
  0x74   :  { %v8_v10 = vpop.permute.xlu0 %7   ;;  %v20_v11 = vpop.permute.xlu1 %19  }
  0x75   :  { %10 = vst.msk [vmem:[#allocation0] sm:$0x1] %vm9_vm1, %v8_v10  }
  0x7c   :  { %v14_v12 = vpop.permute.xlu0 %13   ;;  %v26_v13 = vpop.permute.xlu1 %25  }
  0x7d   :  { %16 = vst.msk [vmem:[#allocation0] sm:$0x1] %vm15_vm2, %v14_v12  }
  0x7e   :  { %22 = vst.msk [vmem:[#allocation0] sm:$0x1] %vm21_vm3, %v20_v11  }
  0x7f   :  { %28 = vst.msk [vmem:[#allocation0] sm:$0x1] %vm27_vm4, %v26_v13  }
  0x80   :  { %34 = vst.msk [vmem:[#allocation0] sm:$0x1] %vm33_vm5, %v32_v8  }
  0x81   :  { %40 = vst.msk [vmem:[#allocation0] sm:$0x1] %vm39_vm6, %v38_v9  }
  0x84   :  { %v44_v14 = vpop.permute.xlu0 %43  }
  0x85   :  { %46 = vst.msk [vmem:[#allocation0] sm:$0x1] %vm45_vm7, %v44_v14  }
  0x8c   :  { %v49_v15 = vld [vmem:[#allocation0] sm:$0x1] }
  0x8d   :  { %52 = vst [vmem:[%s112_s1] sm:$0x1] %v49_v15 }

// kernel: upsampling_deconv_block.2
= control target key start
LH: loop header
LB: loop body
LE: loop exit
PB: predicated region body
PF: predicated region fallthrough
CT: control target
= control target key end

     0   :  { %9 = vsyncpa [#allocation3], 0  ;;  %s1722_s0 = inlined_call_operand.hbm [shape: f32[1024,16], index: 0, kind: input, shape index: {}]   ;;  %s1723_s1 = inlined_call_operand.vmem [shape: f32[1,16], index: 1, kind: input, shape index: {}]   ;;  %s1724_s2 = inlined_call_operand.vmem [shape: f32[2,16,16], index: 2, kind: output, shape index: {0}]   ;;  %s1725_s3 = inlined_call_operand.vmem [shape: f32[2,1,16], index: 3, kind: output, shape index: {1}]  }
   0x1   :  { %11 = vsyncpa [#allocation3 + $0x1], 0  ;;  %s1100_s12 = smov 0   ;;  %s1102_s13 = smov 0  }
   0x2   :  { %s1104_s14 = smov 0   ;;  %s1106_s15 = smov 0  }
   0x3   :  { %s1108_s16 = smov 0   ;;  %s1110_s17 = smov 0  }
   0x4 LB: > { %s825_s18 = sadd.s32 4294967295, %s1075_s17   ;;  %s29_s19 = sadd.s32 1, %s1071_s16  ;;  %s1075_s17 = sphi %s1110_s17, %s17_s17   ;;  %s1071_s16 = sphi %s1108_s16, %s1769_s16   ;;  %s1067_s15 = sphi %s1106_s15, %s1768_s15   ;;  %s1063_s14 = sphi %s1104_s14, %s1767_s14   ;;  %s1059_s13 = sphi %s1102_s13, %s1766_s13   ;;  %s1055_s12 = sphi %s1100_s12, %s1765_s12  }
   0x5   : > { %p31_p0 = scmp.ge.s32.totalorder %s29_s19, 2  ;;  %s38_s20 = sadd.s32 1, %s1063_s14 }
   0x6   : > { %p45_p1 = scmp.ne.s32.totalorder %s1063_s14, %s1059_s13  ;;  %p46_p2 = scmp.eq.s32.totalorder %s1075_s17, 0 }
   0x7   : > { %s1771_s19 = smov (%p31_p0, %s29_s19), 0  ;;  %p51_p4 = scmp.ne.s32.totalorder %s1059_s13, %s1055_s12 }
   0x8   : > { %p1136_p3 = por %p46_p2, %p45_p1  ;;  %s35_s22 = ssub.s32 %s1071_s16, %s1771_s19 }
   0x9   : > { %p52_p5 = scmp.eq.s32.totalorder %s825_s18, 0  ;;  %p36_p6 = scmp.eq.s32.totalorder %s35_s22, 0 }
   0xa   : > { %p858_p8 = scmp.lt.s32.totalorder %s1075_s17, 2  ;;  %s151_s25 = sand.u32 1, %s1063_s14  }
   0xb   : > { %p1143_p7 = por %p52_p5, %p51_p4  ;;  %s838_s26 = sshll.u32 %s1071_s16, 9 }
   0xc   : > { %s1149_s24 = scalar_select %p36_p6, %s1063_s14, %s38_s20  }
   0xd   : > { %s829_s27 = sshll.u32 %s151_s25, 9  ;;  %s161_s30 = scalar_lea.hbm %s1722_s0, %s838_s26 }
   0xe   : > { %s162_s4 = sshll.u32 %s161_s30, 4  ;;  %s155_s5 = scalar_lea.vmem [#allocation2], %s829_s27  ;;  %s163_s4 = int_to_ptr.hbm [resolvable:$true] %s162_s4 }
   0xf   : > { %s164_s6 = sshll.u32 %s155_s5, 4  ;;  %p855_p9 = pnand %p858_p8, %p1136_p3  ;;  %s165_s6 = int_to_ptr.vmem [resolvable:$true] %s164_s6 }
  0x10   : > { %p832_p10 = scmp.ge.s32.totalorder %s1075_s17, 1  ;;  %p172_p11 = scmp.lt.s32.totalorder %s1075_s17, 3 }
  0x11   : > { %s152_s7 = scalar_lea.sflag [#allocation3], %s151_s25  ;;  %s1077_s8 = smov 128  }
  0x12   : > { %s1078_s9 = smov 8   ;;  %p173_p12 = pnand %p832_p10, %p172_p11 }
  0x13   : > { %857 = dma.hbm_to_vmem [thread:$0]  (!%p855_p9), %s163_s4, 8192, %s165_s6, %s152_s7, %s1077_s8, %s1077_s8, %s1078_s9  }
  0x14   : > { %176 = sbr.rel (%p173_p12) target bundleno = 352 (0x160), region = 28 }
  0x19   : > { %s178_s10 = sand.u32 1, %s1059_s13  }
  0x1a   : > { %s833_s11 = sshll.u32 %s178_s10, 9  ;;  %s179_s12 = scalar_lea.sflag [#allocation3], %s178_s10 }
  0x1b   : > { %s1161_s18 = scalar_lea.vmem [#allocation2], %s833_s11 }
  0x1c   : > { %1050 = dma.done.wait (%p1143_p7), %s179_s12, 8192  }
  0x1d   : > { %1052 = vsyncadd (%p1143_p7), %s179_s12, 4294959104  ;;  %v244_v0 = vld [vmem:[%s1161_s18 + $0x80] sm:$0xff]  ;;  %v245_v9 = vld [vmem:[%s1161_s18 + $0x88] sm:$0xff]  ;;  %vm223_vm0 = vcmask 130048   ;;  %p211_p13 = scmp.lt.s32.totalorder %s1067_s15, 1  ;;  %vm226_vm1 = vcmask 122880  }
  0x1e   : > { %v276_v1 = vld [vmem:[%s1161_s18 + $0x180] sm:$0xff]  ;;  %v277_v10 = vld [vmem:[%s1161_s18 + $0x188] sm:$0xff]  ;;  %v246_v21 = vld [vmem:[%s1161_s18 + $0x90] sm:$0xff] }
  0x1f   : > { %v1172_v2 = vld [vmem:[%s1723_s1] ss:$0 sm:$0xff]  ;;  %v229_v12 = vld [vmem:[%s1161_s18 + $0x8] sm:$0xff]  ;;  %v278_v22 = vld [vmem:[%s1161_s18 + $0x190] sm:$0xff]  ;;  %s1773_s15 = smov (!%p211_p13, %s1067_s15), 1 }
  0x20   : > { %v228_v3 = vld [vmem:[%s1161_s18] sm:$0xff]  ;;  %v1177_v5 = vsub.f32 %v244_v0, %v1172_v2  ;;  %v1180_v6 = vsub.f32 %v276_v1, %v1172_v2  ;;  %v261_v13 = vld [vmem:[%s1161_s18 + $0x108] sm:$0xff]  ;;  %v1197_v15 = vsub.f32 %v245_v9, %v1172_v2  ;;  %v1200_v16 = vsub.f32 %v277_v10, %v1172_v2  ;;  %v230_v23 = vld [vmem:[%s1161_s18 + $0x10] sm:$0xff]  ;;  %s839_s22 = sshll.u32 %s1773_s15, 4  ;;  %s218_s29 = scalar_lea.vmem %s1725_s3, %s1773_s15 }
  0x21   : > { %v260_v4 = vld [vmem:[%s1161_s18 + $0x100] sm:$0xff]  ;;  %v1183_v7 = vsub.f32 %v228_v3, %v1172_v2  ;;  %v1203_v17 = vsub.f32 %v229_v12, %v1172_v2  ;;  %v1206_v18 = vsub.f32 %v261_v13, %v1172_v2  ;;  %v262_v24 = vld [vmem:[%s1161_s18 + $0x110] sm:$0xff]  ;;  %v1217_v25 = vsub.f32 %v246_v21, %v1172_v2  ;;  %v247_v34 = vld [vmem:[%s1161_s18 + $0x98] sm:$0xff]  ;;  %s1689_s26 = scalar_lea.vmem %s1724_s2, %s839_s22 }
  0x22   : > { %1745 = vst [vmem:[#allocation5_spill] sm:$0xff] %v1177_v5  ;;  %v1186_v8 = vsub.f32 %v260_v4, %v1172_v2  ;;  %v952_v11 = vpack.i.bf16 %v1177_v5, %v1180_v6  ;;  %v954_v19 = vpack.i.bf16 %v1197_v15, %v1200_v16  ;;  %v1220_v26 = vsub.f32 %v278_v22, %v1172_v2  ;;  %v279_v35 = vld [vmem:[%s1161_s18 + $0x198] sm:$0xff]  ;;  %v232_v44 = vld [vmem:[%s1161_s18 + $0x20] sm:$0xff]  ;;  %v233_v52 = vld [vmem:[%s1161_s18 + $0x28] sm:$0xff] }
  0x23   : > { %1746 = vst [vmem:[#allocation6_spill] sm:$0xff] %v1180_v6  ;;  %v912_v20 = vpack.i.bf16 %v1206_v18, %v1203_v17  ;;  %v1223_v27 = vsub.f32 %v230_v23, %v1172_v2  ;;  %v1226_v28 = vsub.f32 %v262_v24, %v1172_v2  ;;  %v588_v29 = vsel %vm223_vm0, %v1183_v7, 0.0  ;;  %v231_v36 = vld [vmem:[%s1161_s18 + $0x18] sm:$0xff]  ;;  %v248_v50 = vld [vmem:[%s1161_s18 + $0xa0] sm:$0xff]  ;;  %v234_v60 = vld [vmem:[%s1161_s18 + $0x30] sm:$0xff] }
  0x24   : > { %1747 = vst [vmem:[#allocation7_spill] sm:$0xff] %v1183_v7  ;;  %v910_v14 = vpack.i.bf16 %v1186_v8, %v1183_v7  ;;  %953 = vxpose.xlu1.b32.start [1/16] (narrow) %v952_v11, 16  ;;  %v589_v30 = vsel %vm223_vm0, %v1203_v17, 0.0  ;;  %v956_v31 = vpack.i.bf16 %v1217_v25, %v1220_v26  ;;  %v263_v38 = vld [vmem:[%s1161_s18 + $0x118] sm:$0xff]  ;;  %v1243_v39 = vsub.f32 %v247_v34, %v1172_v2  ;;  %v280_v51 = vld [vmem:[%s1161_s18 + $0x1a0] sm:$0xff]  ;;  %v249_v1 = vld [vmem:[%s1161_s18 + $0xa8] sm:$0xff] }
  0x25   : > { %1748 = vst [vmem:[#allocation8_spill] sm:$0xff] %v1186_v8  ;;  %v590_v32 = vadd.f32 %v589_v30, %v588_v29  ;;  %v914_v33 = vpack.i.bf16 %v1226_v28, %v1223_v27  ;;  %v591_v37 = vsel %vm223_vm0, %v1223_v27, 0.0  ;;  %v1246_v40 = vsub.f32 %v279_v35, %v1172_v2  ;;  %v264_v53 = vld [vmem:[%s1161_s18 + $0x120] sm:$0xff]  ;;  %v281_v3 = vld [vmem:[%s1161_s18 + $0x1a8] sm:$0xff]  ;;  %v235_v9 = vld [vmem:[%s1161_s18 + $0x38] sm:$0xff] }
  0x26   : > { %1749 = vst [vmem:[#allocation9_spill] sm:$0xff] %v1200_v16  ;;  %911 = vxpose.xlu0.b32.start [1/16] (narrow) %v910_v14, 16  ;;  %v1249_v41 = vsub.f32 %v231_v36, %v1172_v2  ;;  %v1252_v43 = vsub.f32 %v263_v38, %v1172_v2  ;;  %v1260_v47 = vsub.f32 %v232_v44, %v1172_v2  ;;  %v265_v10 = vld [vmem:[%s1161_s18 + $0x128] sm:$0xff]  ;;  %v236_v21 = vld [vmem:[%s1161_s18 + $0x40] sm:$0xff]  ;;  %v250_v30 = vld [vmem:[%s1161_s18 + $0xb0] sm:$0xff] }
  0x27   : > { %1750 = vst [vmem:[#allocation10_spill] sm:$0xff] %v1203_v17  ;;  %v592_v42 = vadd.f32 %v591_v37, %v590_v32  ;;  %v958_v46 = vpack.i.bf16 %v1243_v39, %v1246_v40  ;;  %v1271_v55 = vsub.f32 %v248_v50, %v1172_v2  ;;  %v1274_v56 = vsub.f32 %v280_v51, %v1172_v2  ;;  %v266_v34 = vld [vmem:[%s1161_s18 + $0x130] sm:$0xff]  ;;  %v251_v50 = vld [vmem:[%s1161_s18 + $0xb8] sm:$0xff]  ;;  %v288_v16 = vld [vmem:[%s1161_s18 + $0x1e0] sm:$0xff] }
  0x28   : > { %1751 = vst [vmem:[#allocation11_spill] sm:$0xff] %v1206_v18  ;;  %v593_v45 = vsel %vm223_vm0, %v1249_v41, 0.0  ;;  %v916_v48 = vpack.i.bf16 %v1252_v43, %v1249_v41  ;;  %v595_v54 = vsel %vm223_vm0, %v1260_v47, 0.0  ;;  %v1277_v57 = vsub.f32 %v233_v52, %v1172_v2  ;;  %v283_v51 = vld [vmem:[%s1161_s18 + $0x1b8] sm:$0xff]  ;;  %v274_v8 = vld [vmem:[%s1161_s18 + $0x170] sm:$0xff] }
  0x29   : > { %1752 = vst [vmem:[#allocation12_spill] sm:$0xff] %v1220_v26  ;;  %v594_v49 = vadd.f32 %v593_v45, %v592_v42  ;;  %v1280_v58 = vsub.f32 %v264_v53, %v1172_v2  ;;  %v960_v62 = vpack.i.bf16 %v1271_v55, %v1274_v56  ;;  %v1288_v63 = vsub.f32 %v234_v60, %v1172_v2  ;;  %v267_v53 = vld [vmem:[%s1161_s18 + $0x138] sm:$0xff]  ;;  %v289_v26 = vld [vmem:[%s1161_s18 + $0x1e8] sm:$0xff] }
  0x2a   : > { %1753 = vst [vmem:[#allocation13_spill] sm:$0xff] %v1246_v40  ;;  %v597_v61 = vsel %vm223_vm0, %v1277_v57, 0.0  ;;  %v1299_v12 = vsub.f32 %v249_v1, %v1172_v2  ;;  %v1302_v13 = vsub.f32 %v281_v3, %v1172_v2  ;;  %v1305_v14 = vsub.f32 %v235_v9, %v1172_v2  ;;  %v239_v3 = vld [vmem:[%s1161_s18 + $0x58] sm:$0xff]  ;;  %v252_v9 = vld [vmem:[%s1161_s18 + $0xc0] sm:$0xff]  ;;  %v273_v40 = vld [vmem:[%s1161_s18 + $0x168] sm:$0xff] }
  0x2b   : > { %v596_v59 = vadd.f32 %v595_v54, %v594_v49  ;;  %v918_v0 = vpack.i.bf16 %v1280_v58, %v1260_v47  ;;  %v599_v11 = vsel %vm223_vm0, %v1288_v63, 0.0  ;;  %v1316_v24 = vsub.f32 %v236_v21, %v1172_v2  ;;  %v275_v6 = vld [vmem:[%s1161_s18 + $0x178] sm:$0xff] }
  0x2c   : > { %955 = vxpose.xlu1.b32.cont [2/16] (narrow) %v954_v19, 16  ;;  %v1308_v19 = vsub.f32 %v265_v10, %v1172_v2  ;;  %v601_v22 = vsel %vm223_vm0, %v1305_v14, 0.0  ;;  %v962_v23 = vpack.i.bf16 %v1299_v12, %v1302_v13  ;;  %v1327_v36 = vsub.f32 %v250_v30, %v1172_v2  ;;  %v284_v10 = vld [vmem:[%s1161_s18 + $0x1c0] sm:$0xff] }
  0x2d   : > { %v598_v4 = vadd.f32 %v597_v61, %v596_v59  ;;  %v603_v35 = vsel %vm223_vm0, %v1316_v24, 0.0  ;;  %v1336_v42 = vsub.f32 %v266_v34, %v1172_v2  ;;  %v1352_v59 = vsub.f32 %v251_v50, %v1172_v2  ;;  %v253_v34 = vld [vmem:[%s1161_s18 + $0xc8] sm:$0xff] }
  0x2e   : > { %913 = vxpose.xlu0.b32.cont [2/16] (narrow) %v912_v20, 16  ;;  %v920_v29 = vpack.i.bf16 %v1308_v19, %v1277_v57  ;;  %v1355_v60 = vsub.f32 %v283_v51, %v1172_v2  ;;  %v1374_v21 = vsub.f32 %v252_v9, %v1172_v2  ;;  %v619_v17 = vsel %vm223_vm0, %v1177_v5, 0.0 }
  0x2f   : > { %v600_v20 = vadd.f32 %v599_v11, %v598_v4  ;;  %v922_v49 = vpack.i.bf16 %v1336_v42, %v1288_v63  ;;  %v268_v11 = vld [vmem:[%s1161_s18 + $0x140] sm:$0xff] }
  0x30   : > { %v966_v1 = vpack.i.bf16 %v1352_v59, %v1355_v60 }
  0x31   : > { %v602_v32 = vadd.f32 %v601_v22, %v600_v20  ;;  %v1371_v20 = vsub.f32 %v239_v3, %v1172_v2  ;;  %v1377_v22 = vsub.f32 %v284_v10, %v1172_v2  ;;  %v270_v3 = vld [vmem:[%s1161_s18 + $0x150] sm:$0xff] }
  0x33   : > { %v604_v44 = vadd.f32 %v603_v35, %v602_v32  ;;  %v240_v32 = vld [vmem:[%s1161_s18 + $0x60] sm:$0xff]  ;;  %v285_v35 = vld [vmem:[%s1161_s18 + $0x1c8] sm:$0xff] }
  0x34   : > { %957 = vxpose.xlu1.b32.cont [3/16] (narrow) %v956_v31, 16  ;;  %v282_v31 = vld [vmem:[%s1161_s18 + $0x1b0] sm:$0xff] }
  0x35   : > { %v1330_v37 = vsub.f32 %v282_v31, %v1172_v2  ;;  %v968_v31 = vpack.i.bf16 %v1374_v21, %v1377_v22 }
  0x36   : > { %915 = vxpose.xlu0.b32.cont [3/16] (narrow) %v914_v33, 16  ;;  %v237_v33 = vld [vmem:[%s1161_s18 + $0x48] sm:$0xff] }
  0x37   : > { %v1333_v38 = vsub.f32 %v237_v33, %v1172_v2 }
  0x39   : > { %v605_v45 = vsel %vm223_vm0, %v1333_v38, 0.0 }
  0x3a   : > { %v606_v52 = vadd.f32 %v605_v45, %v604_v44  ;;  %v269_v44 = vld [vmem:[%s1161_s18 + $0x148] sm:$0xff]  ;;  %v1393_v45 = vsub.f32 %v240_v32, %v1172_v2  ;;  %v242_v32 = vld [vmem:[%s1161_s18 + $0x70] sm:$0xff] }
  0x3b   : > { %v1404_v50 = vsub.f32 %v269_v44, %v1172_v2  ;;  %v271_v44 = vld [vmem:[%s1161_s18 + $0x158] sm:$0xff] }
  0x3c   : > { %959 = vxpose.xlu1.b32.cont [4/16] (narrow) %v958_v46, 16  ;;  %v964_v46 = vpack.i.bf16 %v1327_v36, %v1330_v37 }
  0x3e   : > { %917 = vxpose.xlu0.b32.cont [4/16] (narrow) %v916_v48, 16  ;;  %v238_v48 = vld [vmem:[%s1161_s18 + $0x50] sm:$0xff] }
  0x3f   : > { %v1349_v54 = vsub.f32 %v238_v48, %v1172_v2  ;;  %v1399_v48 = vsub.f32 %v285_v35, %v1172_v2  ;;  %v287_v35 = vld [vmem:[%s1161_s18 + $0x1d8] sm:$0xff] }
  0x41   : > { %v607_v61 = vsel %vm223_vm0, %v1349_v54, 0.0 }
  0x44   : > { %961 = vxpose.xlu1.b32.cont [5/16] (narrow) %v960_v62, 16  ;;  %v1360_v62 = vsub.f32 %v267_v53, %v1172_v2  ;;  %v241_v53 = vld [vmem:[%s1161_s18 + $0x68] sm:$0xff] }
  0x46   : > { %919 = vxpose.xlu0.b32.cont [5/16] (narrow) %v918_v0, 16  ;;  %v608_v0 = vadd.f32 %v607_v61, %v606_v52  ;;  %v924_v4 = vpack.i.bf16 %v1360_v62, %v1305_v14  ;;  %v928_v61 = vpack.i.bf16 %v1404_v50, %v1333_v38 }
  0x4c   : > { %963 = vxpose.xlu1.b32.cont [6/16] (narrow) %v962_v23, 16  ;;  %v609_v23 = vsel %vm223_vm0, %v1371_v20, 0.0 }
  0x4d   : > { %v610_v30 = vadd.f32 %v609_v23, %v608_v0  ;;  %v254_v0 = vld [vmem:[%s1161_s18 + $0xd0] sm:$0xff]  ;;  %v1426_v23 = vsub.f32 %v270_v3, %v1172_v2 }
  0x4e   : > { %921 = vxpose.xlu0.b32.cont [6/16] (narrow) %v920_v29, 16  ;;  %v1382_v29 = vsub.f32 %v268_v11, %v1172_v2  ;;  %v1418_v9 = vsub.f32 %v254_v0, %v1172_v2  ;;  %v1449_v0 = vsub.f32 %v271_v44, %v1172_v2 }
  0x50   : > { %v926_v33 = vpack.i.bf16 %v1382_v29, %v1316_v24 }
  0x54   : > { %965 = vxpose.xlu1.b32.cont [7/16] (narrow) %v964_v46, 16  ;;  %v1396_v46 = vsub.f32 %v253_v34, %v1172_v2  ;;  %v255_v34 = vld [vmem:[%s1161_s18 + $0xd8] sm:$0xff] }
  0x56   : > { %923 = vxpose.xlu0.b32.cont [7/16] (narrow) %v922_v49, 16  ;;  %v611_v49 = vsel %vm223_vm0, %v1393_v45, 0.0  ;;  %v970_v52 = vpack.i.bf16 %v1396_v46, %v1399_v48 }
  0x57   : > { %v612_v51 = vadd.f32 %v611_v49, %v610_v30  ;;  %v1437_v49 = vsub.f32 %v242_v32, %v1172_v2 }
  0x5c   : > { %967 = vxpose.xlu1.b32.cont [8/16] (narrow) %v966_v1, 16  ;;  %v286_v1 = vld [vmem:[%s1161_s18 + $0x1d0] sm:$0xff] }
  0x5d   : > { %v1421_v10 = vsub.f32 %v286_v1, %v1172_v2  ;;  %v290_v1 = vld [vmem:[%s1161_s18 + $0x1f0] sm:$0xff] }
  0x5e   : > { %925 = vxpose.xlu0.b32.cont [8/16] (narrow) %v924_v4, 16  ;;  %v1415_v4 = vsub.f32 %v241_v53, %v1172_v2  ;;  %v258_v53 = vld [vmem:[%s1161_s18 + $0xf0] sm:$0xff] }
  0x5f   : > { %v1464_v44 = vsub.f32 %v258_v53, %v1172_v2  ;;  %v1482_v53 = vsub.f32 %v275_v6, %v1172_v2 }
  0x60   : > { %v613_v11 = vsel %vm223_vm0, %v1415_v4, 0.0 }
  0x61   : > { %v614_v30 = vadd.f32 %v613_v11, %v612_v51  ;;  %v1443_v51 = vsub.f32 %v287_v35, %v1172_v2  ;;  %v259_v11 = vld [vmem:[%s1161_s18 + $0xf8] sm:$0xff]  ;;  %v257_v35 = vld [vmem:[%s1161_s18 + $0xe8] sm:$0xff]  ;;  %536 = vmatpush.msra.mxu2 %v1482_v53 }
  0x62   : > { %v1455_v32 = vsub.f32 %v259_v11, %v1172_v2  ;;  %v932_v11 = vpack.i.bf16 %v1449_v0, %v1371_v20  ;;  %v1487_v18 = vsub.f32 %v257_v35, %v1172_v2  ;;  %v1503_v35 = vsub.f32 %v274_v8, %v1172_v2 }
  0x63   : > { %v1518_v8 = vsub.f32 %v273_v40, %v1172_v2 }
  0x64   : > { %969 = vxpose.xlu1.b32.cont [9/16] (narrow) %v968_v31, 16  ;;  %v972_v31 = vpack.i.bf16 %v1418_v9, %v1421_v10  ;;  %1754 = vst [vmem:[#allocation14_spill] sm:$0xff] %v1455_v32  ;;  %513 = vmatpush.msra.mxu1 %v1455_v32 }
  0x65   : > { %537 = vmatpush.msra.mxu2 %v1503_v35 }
  0x66   : > { %927 = vxpose.xlu0.b32.cont [9/16] (narrow) %v926_v33, 16  ;;  %v930_v33 = vpack.i.bf16 %v1426_v23, %v1349_v54  ;;  %514 = vmatpush.msra.mxu1 %v1464_v44 }
  0x67   : > { %538 = vmatpush.msra.mxu2 %v1518_v8 }
  0x68   : > { %515 = vmatpush.msra.mxu1 %v1487_v18 }
  0x6c   : > { %971 = vxpose.xlu1.b32.cont [10/16] (narrow) %v970_v52, 16  ;;  %v1440_v52 = vsub.f32 %v255_v34, %v1172_v2 }
  0x6e   : > { %929 = vxpose.xlu0.b32.cont [10/16] (narrow) %v928_v61, 16  ;;  %v615_v61 = vsel %vm223_vm0, %v1437_v49, 0.0 }
  0x6f   : > { %v616_v3 = vadd.f32 %v615_v61, %v614_v30  ;;  %v1467_v30 = vsub.f32 %v290_v1, %v1172_v2  ;;  %v243_v61 = vld [vmem:[%s1161_s18 + $0x78] sm:$0xff]  ;;  %v272_v1 = vld [vmem:[%s1161_s18 + $0x160] sm:$0xff] }
  0x70   : > { %v1479_v7 = vsub.f32 %v243_v61, %v1172_v2  ;;  %v1500_v61 = vsub.f32 %v288_v16, %v1172_v2  ;;  %v1509_v5 = vsub.f32 %v272_v1, %v1172_v2  ;;  %v621_v16 = vsel %vm223_vm0, %v1197_v15, 0.0 }
  0x71   : > { %v627_v1 = vsel %vm223_vm0, %v1271_v55, 0.0 }
  0x72   : > { %490 = vmatpush.msra.mxu0 %v1479_v7  ;;  %v617_v32 = vsel %vm223_vm0, %v1479_v7, 0.0  ;;  %539 = vmatpush.msra.mxu2 %v1509_v5 }
  0x74   : > { %973 = vxpose.xlu1.b32.cont [11/16] (narrow) %v972_v31, 16  ;;  %v291_v31 = vld [vmem:[%s1161_s18 + $0x1f8] sm:$0xff]  ;;  %491 = vmatpush.msra.mxu0 %v1437_v49 }
  0x75   : > { %v1458_v34 = vsub.f32 %v291_v31, %v1172_v2  ;;  %v256_v31 = vld [vmem:[%s1161_s18 + $0xe0] sm:$0xff]  ;;  %540 = vmatpush.msra.mxu2 %v1449_v0 }
  0x76   : > { %931 = vxpose.xlu0.b32.cont [11/16] (narrow) %v930_v33, 16  ;;  %v974_v33 = vpack.i.bf16 %v1440_v52, %v1443_v51  ;;  %v1497_v6 = vsub.f32 %v256_v31, %v1172_v2  ;;  %v618_v31 = vadd.f32 %v617_v32, %v616_v3  ;;  %492 = vmatpush.msra.mxu0 %v1415_v4 }
  0x77   : > { %559 = vmatpush.msra.mxu3 %v1458_v34  ;;  %541 = vmatpush.msra.mxu2 %v1426_v23 }
  0x78   : > { %516 = vmatpush.msra.mxu1 %v1497_v6  ;;  %v976_v3 = vpack.i.bf16 %v1497_v6, %v1500_v61  ;;  %493 = vmatpush.msra.mxu0 %v1393_v45 }
  0x79   : > { %560 = vmatpush.msra.mxu3 %v1467_v30  ;;  %542 = vmatpush.msra.mxu2 %v1404_v50 }
  0x7a   : > { %517 = vmatpush.msra.mxu1 %v1440_v52  ;;  %494 = vmatpush.msra.mxu0 %v1371_v20 }
  0x7b   : > { %543 = vmatpush.msra.mxu2 %v1382_v29 }
  0x7c   : > { %975 = vxpose.xlu1.b32.cont [12/16] (narrow) %v974_v33, 16  ;;  %v1512_v33 = vsub.f32 %v289_v26, %v1172_v2  ;;  %v623_v26 = vsel %vm223_vm0, %v1217_v25, 0.0  ;;  %v934_v2 = vpack.i.bf16 %v1509_v5, %v1393_v45  ;;  %518 = vmatpush.msra.mxu1 %v1418_v9 }
  0x7d   : > { %495 = vmatpush.msra.mxu0 %v1349_v54  ;;  %v936_v54 = vpack.i.bf16 %v1518_v8, %v1415_v4  ;;  %v635_v4 = vsel %vm223_vm0, %v1374_v21, 0.0  ;;  %544 = vmatpush.msra.mxu2 %v1360_v62 }
  0x7e   : > { %933 = vxpose.xlu0.b32.cont [12/16] (narrow) %v932_v11, 16  ;;  %v620_v11 = vadd.f32 %v619_v17, %v618_v31  ;;  %561 = vmatpush.msra.mxu3 %v1512_v33  ;;  %v625_v17 = vsel %vm223_vm0, %v1243_v39, 0.0  ;;  %v629_v31 = vsel %vm223_vm0, %v1299_v12, 0.0 }
  0x7f   : > { %519 = vmatpush.msra.mxu1 %v1396_v46  ;;  %496 = vmatpush.msra.mxu0 %v1333_v38  ;;  %v633_v38 = vsel %vm223_vm0, %v1352_v59, 0.0 }
  0x80   : > { %v622_v40 = vadd.f32 %v621_v16, %v620_v11  ;;  %562 = vmatpush.msra.mxu3 %v1500_v61  ;;  %v631_v16 = vsel %vm223_vm0, %v1327_v36, 0.0  ;;  %v978_v11 = vpack.i.bf16 %v1487_v18, %v1512_v33  ;;  %545 = vmatpush.msra.mxu2 %v1336_v42 }
  0x81   : > { %520 = vmatpush.msra.mxu1 %v1374_v21  ;;  %497 = vmatpush.msra.mxu0 %v1316_v24  ;;  %v980_v21 = vpack.i.bf16 %v1464_v44, %v1467_v30 }
  0x82   : > { %v624_v32 = vadd.f32 %v623_v26, %v622_v40  ;;  %563 = vmatpush.msra.mxu3 %v1443_v51  ;;  %546 = vmatpush.msra.mxu2 %v1308_v19 }
  0x83   : > { %521 = vmatpush.msra.mxu1 %v1352_v59  ;;  %498 = vmatpush.msra.mxu0 %v1305_v14  ;;  %v639_v59 = vsel %vm223_vm0, %v1418_v9, 0.0 }
  0x84   : > { %977 = vxpose.xlu1.b32.cont [13/16] (narrow) %v976_v3, 16  ;;  %v626_v45 = vadd.f32 %v625_v17, %v624_v32  ;;  %564 = vmatpush.msra.mxu3 %v1421_v10  ;;  %v1759_v17 = vld [vmem:[#allocation12_spill] sm:$0xff] }
  0x85   : > { %499 = vmatpush.msra.mxu0 %v1288_v63  ;;  %522 = vmatpush.msra.mxu1 %v1327_v36  ;;  %v938_v63 = vpack.i.bf16 %v1503_v35, %v1437_v49 }
  0x86   : > { %935 = vxpose.xlu0.b32.cont [13/16] (narrow) %v934_v2, 16  ;;  %v628_v20 = vadd.f32 %v627_v1, %v626_v45  ;;  %565 = vmatpush.msra.mxu3 %v1399_v48  ;;  %v637_v2 = vsel %vm223_vm0, %v1396_v46, 0.0  ;;  %v1761_v1 = vld [vmem:[#allocation5_spill] sm:$0xff]  ;;  %v1762_v45 = vld [vmem:[#allocation8_spill] sm:$0xff] }
  0x87   : > { %500 = vmatpush.msra.mxu0 %v1277_v57  ;;  %523 = vmatpush.msra.mxu1 %v1299_v12  ;;  %v641_v57 = vsel %vm223_vm0, %v1440_v52, 0.0  ;;  %v643_v12 = vsel %vm223_vm0, %v1497_v6, 0.0  ;;  %v1756_v52 = vld [vmem:[#allocation13_spill] sm:$0xff]  ;;  %v1757_v6 = vld [vmem:[#allocation10_spill] sm:$0xff] }
  0x88   : > { %v630_v26 = vadd.f32 %v629_v31, %v628_v20  ;;  %566 = vmatpush.msra.mxu3 %v1377_v22  ;;  %547 = vmatpush.msra.mxu2 %v1280_v58  ;;  %v1763_v31 = vld [vmem:[#allocation9_spill] sm:$0xff] }
  0x89   : > { %501 = vmatpush.msra.mxu0 %v1260_v47  ;;  %524 = vmatpush.msra.mxu1 %v1271_v55  ;;  %v645_v55 = vsel %vm223_vm0, %v1487_v18, 0.0  ;;  %v940_v18 = vpack.i.bf16 %v1482_v53, %v1479_v7  ;;  %v651_v7 = vsel %vm223_vm0, %v1762_v45, 0.0 }
  0x8a   : > { %v632_v3 = vadd.f32 %v631_v16, %v630_v26  ;;  %567 = vmatpush.msra.mxu3 %v1355_v60  ;;  %548 = vmatpush.msra.mxu2 %v1252_v43  ;;  %v1764_v16 = vld [vmem:[#allocation6_spill] sm:$0xff] }
  0x8b   : > { %502 = vmatpush.msra.mxu0 %v1249_v41  ;;  %525 = vmatpush.msra.mxu1 %v1243_v39  ;;  %v647_v41 = vsel %vm223_vm0, %v1464_v44, 0.0  ;;  %v1755_v39 = vld [vmem:[#allocation14_spill] sm:$0xff]  ;;  %v1760_v44 = vld [vmem:[#allocation7_spill] sm:$0xff] }
  0x8c   : > { %979 = vxpose.xlu1.b32.cont [14/16] (narrow) %v978_v11, 16  ;;  %v634_v24 = vadd.f32 %v633_v38, %v632_v3  ;;  %568 = vmatpush.msra.mxu3 %v1330_v37  ;;  %v982_v49 = vpack.i.bf16 %v1755_v39, %v1458_v34  ;;  %v657_v38 = vsel %vm223_vm0, %v1252_v43, 0.0  ;;  %v667_v43 = vsel %vm223_vm0, %v1382_v29, 0.0 }
  0x8d   : > { %503 = vmatpush.msra.mxu0 %v1223_v27  ;;  %526 = vmatpush.msra.mxu1 %v1217_v25  ;;  %v1758_v27 = vld [vmem:[#allocation11_spill] sm:$0xff]  ;;  %v649_v25 = vsel %vm223_vm0, %v1755_v39, 0.0  ;;  %v677_v29 = vsel %vm223_vm0, %v1518_v8, 0.0  ;;  %v687_v8 = vsel %vm223_vm0, %v1759_v17, 0.0 }
  0x8e   : > { %937 = vxpose.xlu0.b32.cont [14/16] (narrow) %v936_v54, 16  ;;  %v636_v14 = vadd.f32 %v635_v4, %v634_v24  ;;  %569 = vmatpush.msra.mxu3 %v1302_v13  ;;  %v653_v20 = vsel %vm223_vm0, %v1758_v27, 0.0  ;;  %v655_v54 = vsel %vm223_vm0, %v1226_v28, 0.0  ;;  %v659_v4 = vsel %vm223_vm0, %v1280_v58, 0.0 }
  0x8f   : > { %549 = vmatpush.msra.mxu2 %v1226_v28  ;;  %504 = vmatpush.msra.mxu0 %v1757_v6  ;;  %v665_v28 = vsel %vm223_vm0, %v1360_v62, 0.0  ;;  %v669_v58 = vsel %vm223_vm0, %v1404_v50, 0.0  ;;  %v675_v62 = vsel %vm223_vm0, %v1509_v5, 0.0  ;;  %v679_v50 = vsel %vm223_vm0, %v1503_v35, 0.0 }
  0x90   : > { %v638_v36 = vadd.f32 %v637_v2, %v636_v14  ;;  %570 = vmatpush.msra.mxu3 %v1274_v56  ;;  %527 = vmatpush.msra.mxu1 %v1197_v15  ;;  %v661_v2 = vsel %vm223_vm0, %v1308_v19, 0.0  ;;  %v671_v19 = vsel %vm223_vm0, %v1426_v23, 0.0  ;;  %v681_v23 = vsel %vm223_vm0, %v1482_v53, 0.0 }
  0x91   : > { %550 = vmatpush.msra.mxu2 %v1758_v27  ;;  %505 = vmatpush.msra.mxu0 %v1760_v44  ;;  %v685_v5 = vsel %vm223_vm0, %v1763_v31, 0.0  ;;  %v689_v35 = vsel %vm223_vm0, %v1756_v52, 0.0  ;;  %v691_v53 = vsel %vm223_vm0, %v1274_v56, 0.0  ;;  %v693_v27 = vsel %vm223_vm0, %v1302_v13, 0.0 }
  0x92   : > { %v640_v46 = vadd.f32 %v639_v59, %v638_v36  ;;  %571 = vmatpush.msra.mxu3 %v1756_v52  ;;  %528 = vmatpush.msra.mxu1 %v1761_v1  ;;  %v663_v59 = vsel %vm223_vm0, %v1336_v42, 0.0  ;;  %v673_v42 = vsel %vm223_vm0, %v1449_v0, 0.0  ;;  %v683_v0 = vsel %vm223_vm0, %v1764_v16, 0.0 }
  0x93   : > { %551 = vmatpush.msra.mxu2 %v1762_v45  ;;  %v695_v44 = vsel %vm223_vm0, %v1330_v37, 0.0  ;;  %v701_v37 = vsel %vm223_vm0, %v1399_v48, 0.0  ;;  %v707_v48 = vsel %vm223_vm0, %v1500_v61, 0.0 }
  0x94   : > { %981 = vxpose.xlu1.b32.cont [15/16] (narrow) %v980_v21, 16  ;;  %v642_v47 = vadd.f32 %v641_v57, %v640_v46  ;;  %572 = vmatpush.msra.mxu3 %v1759_v17 }
  0x96   : > { %939 = vxpose.xlu0.b32.cont [15/16] (narrow) %v938_v63, 16  ;;  %v644_v9 = vadd.f32 %v643_v12, %v642_v47  ;;  %573 = vmatpush.msra.mxu3 %v1763_v31 }
  0x98   : > { %v646_v40 = vadd.f32 %v645_v55, %v644_v9  ;;  %574 = vmatpush.msra.mxu3 %v1764_v16  ;;  %v703_v16 = vsel %vm223_vm0, %v1421_v10, 0.0 }
  0x9a   : > { %v648_v32 = vadd.f32 %v647_v41, %v646_v40 }
  0x9c   : > { %983 = vxpose.xlu1.b32.end [16/16] (narrow) %v982_v49, 16  ;;  %v650_v15 = vadd.f32 %v649_v25, %v648_v32  ;;  %v697_v32 = vsel %vm223_vm0, %v1355_v60, 0.0 }
  0x9e   : > { %941 = vxpose.xlu0.b32.end [16/16] (narrow) %v940_v18, 16  ;;  %v652_v11 = vadd.f32 %v651_v7, %v650_v15 }
  0xa0   : > { %v654_v26 = vadd.f32 %v653_v20, %v652_v11  ;;  %v699_v20 = vsel %vm223_vm0, %v1377_v22, 0.0  ;;  %v705_v11 = vsel %vm223_vm0, %v1443_v51, 0.0  ;;  %v709_v51 = vsel %vm223_vm0, %v1512_v33, 0.0 }
  0xa2   : > { %v656_v3 = vadd.f32 %v655_v54, %v654_v26 }
  0xa4   : > { %v658_v24 = vadd.f32 %v657_v38, %v656_v3 }
  0xa6   : > { %v660_v14 = vadd.f32 %v659_v4, %v658_v24 }
  0xa8   : > { %v662_v21 = vadd.f32 %v661_v2, %v660_v14 }
  0xaa   : > { %v664_v63 = vadd.f32 %v663_v59, %v662_v21  ;;  %v711_v59 = vsel %vm223_vm0, %v1467_v30, 0.0  ;;  %v1079_v30 = vmov 0.0  }
  0xab   : > { %224 = vst.msk [vmem:[%s1689_s26] sm:$0xff] %vm223_vm0, %v1079_v30 }
  0xac   : > { %v666_v36 = vadd.f32 %v665_v28, %v664_v63  ;;  %v713_v28 = vsel %vm223_vm0, %v1458_v34, 0.0  ;;  %225 = vst.msk [vmem:[%s1689_s26 + $0x8] sm:$0xff] %vm223_vm0, %v1079_v30 }
  0xad   : > { %227 = vst.msk [vmem:[%s218_s29] sm:$0x1] %vm226_vm1, %v1079_v30 }
  0xae   : > { %v668_v57 = vadd.f32 %v667_v43, %v666_v36 }
  0xb0   : > { %v670_v46 = vadd.f32 %v669_v58, %v668_v57 }
  0xb2   : > { %v672_v12 = vadd.f32 %v671_v19, %v670_v46 }
  0xb4   : > { %v674_v47 = vadd.f32 %v673_v42, %v672_v12  ;;  %v587_v19 = vld [vmem:[%s218_s29] sm:$0x1] }
  0xb6   : > { %v676_v55 = vadd.f32 %v675_v62, %v674_v47 }
  0xb8   : > { %v678_v9 = vadd.f32 %v677_v29, %v676_v55 }
  0xba   : > { %v680_v41 = vadd.f32 %v679_v50, %v678_v9  ;;  %v360_v50 = vld [vmem:[%s1689_s26] sm:$0xff] }
  0xbc   : > { %v682_v39 = vadd.f32 %v681_v23, %v680_v41 }
  0xbe   : > { %v684_v49 = vadd.f32 %v683_v0, %v682_v39 }
  0xc0   : > { %v686_v6 = vadd.f32 %v685_v5, %v684_v49 }
  0xc2   : > { %v688_v18 = vadd.f32 %v687_v8, %v686_v6  ;;  %v361_v6 = vld [vmem:[%s1689_s26 + $0x8] sm:$0xff] }
  0xc4   : > { %v690_v40 = vadd.f32 %v689_v35, %v688_v18 }
  0xc6   : > { %v692_v25 = vadd.f32 %v691_v53, %v690_v40 }
  0xc8   : > { %v984_v17 = vpop.trf.xlu1  ;;  %v694_v1 = vadd.f32 %v693_v27, %v692_v25 }
  0xc9   : > { %v988_v7 = vunpack.i.h.bf16 %v984_v17  ;;  %v985_v56 = vunpack.i.l.bf16 %v984_v17 }
  0xca   : > { %v942_v45 = vpop.trf.xlu0  ;;  %v696_v15 = vadd.f32 %v695_v44, %v694_v1 }
  0xcb   : > { %v943_v52 = vunpack.i.l.bf16 %v942_v45  ;;  %v946_v31 = vunpack.i.h.bf16 %v942_v45  ;;  %529 = vmatmul.f32.vlgmr.msra.gmra.mxu1 %v988_v7  ;;  %575 = vmatmul.f32.vlgmr.msra.gmra.mxu3 %v985_v56 }
  0xcc   : > { %v698_v13 = vadd.f32 %v697_v32, %v696_v15 }
  0xcd   : > { %506 = vmatmul.f32.vlgmr.msra.gmra.mxu0 %v943_v52  ;;  %552 = vmatmul.f32.vlgmr.msra.gmra.mxu2 %v946_v31 }
  0xce   : > { %v700_v60 = vadd.f32 %v699_v20, %v698_v13 }
  0xd0   : > { %v989_v54 = vpop.trf.xlu1  ;;  %v702_v26 = vadd.f32 %v701_v37, %v700_v60 }
  0xd1   : > { %v993_v3 = vunpack.i.h.bf16 %v989_v54  ;;  %v990_v2 = vunpack.i.l.bf16 %v989_v54 }
  0xd2   : > { %v947_v38 = vpop.trf.xlu0  ;;  %v704_v24 = vadd.f32 %v703_v16, %v702_v26 }
  0xd3   : > { %v948_v4 = vunpack.i.l.bf16 %v947_v38  ;;  %v951_v22 = vunpack.i.h.bf16 %v947_v38  ;;  %532 = vmatmul.f32.gmra.mxu1 %v993_v3  ;;  %578 = vmatmul.f32.gmra.mxu3 %v990_v2 }
  0xd4   : > { %v706_v10 = vadd.f32 %v705_v11, %v704_v24 }
  0xd5   : > { %509 = vmatmul.f32.gmra.mxu0 %v948_v4  ;;  %555 = vmatmul.f32.gmra.mxu2 %v951_v22 }
  0xd6   : > { %v708_v14 = vadd.f32 %v707_v48, %v706_v10 }
  0xd8   : > { %v710_v21 = vadd.f32 %v709_v51, %v708_v14 }
  0xda   : > { %v712_v63 = vadd.f32 %v711_v59, %v710_v21 }
  0xdc   : > { %v714_v43 = vadd.f32 %v713_v28, %v712_v63 }
  0xde   : > { %v715_v61 = vrot.slane %v714_v43, 4 }
  0xe0   : > { %v716_v36 = vadd.f32 %v715_v61, %v714_v43 }
  0xe2   : > { %v717_v33 = vrot.slane %v716_v36, 2 }
  0xe4   : > { %v718_v34 = vadd.f32 %v717_v33, %v716_v36 }
  0xe6   : > { %v719_v58 = vrot.slane %v718_v34, 1 }
  0xe8   : > { %v720_v57 = vadd.f32 %v719_v58, %v718_v34 }
  0xea   : > { %v721_v46 = vadd.f32 %v720_v57, %v587_v19 }
  0xec   : > { %723 = vst.msk [vmem:[%s218_s29] sm:$0x1] %vm226_vm1, %v721_v46 }
 0x148   : > { %v530_v12 = vpop.f32.mrf.mxu1 }
 0x14a   : > { %v507_v42 = vpop.f32.mrf.mxu0 }
 0x14b   : > { %v531_v62 = vadd.f32 %v530_v12, %v507_v42 }
 0x14e   : > { %v576_v55 = vpop.f32.mrf.mxu3 }
 0x150   : > { %v553_v47 = vpop.f32.mrf.mxu2  ;;  %v533_v41 = vpop.f32.mrf.mxu1 }
 0x151   : > { %v554_v29 = vadd.f32 %v553_v47, %v531_v62 }
 0x152   : > { %v510_v23 = vpop.f32.mrf.mxu0 }
 0x153   : > { %v577_v9 = vadd.f32 %v576_v55, %v554_v29  ;;  %v534_v39 = vadd.f32 %v533_v41, %v510_v23 }
 0x155   : > { %v582_v0 = vadd.f32 %v577_v9, %v360_v50 }
 0x156   : > { %v579_v8 = vpop.f32.mrf.mxu3 }
 0x157   : > { %585 = vst.msk [vmem:[%s1689_s26] sm:$0xff] %vm223_vm0, %v582_v0 }
 0x158   : > { %v556_v5 = vpop.f32.mrf.mxu2 }
 0x159   : > { %v557_v49 = vadd.f32 %v556_v5, %v534_v39 }
 0x15b   : > { %v580_v35 = vadd.f32 %v579_v8, %v557_v49 }
 0x15d   : > { %v583_v18 = vadd.f32 %v580_v35, %v361_v6 }
 0x15f   : > { %586 = vst.msk [vmem:[%s1689_s26 + $0x8] sm:$0xff] %vm223_vm0, %v583_v18 }
 0x160 PF: > { %s17_s17 = sadd.s32 1, %s1075_s17   ;;  %s1765_s12 = smov %s1059_s13 }
 0x161   : > { %p14_p0 = scmp.ge.s32.totalorder %s17_s17, 4   ;;  %s1766_s13 = smov %s1063_s14 }
 0x162   : > { %s1767_s14 = smov %s1149_s24  ;;  %s1768_s15 = smov %s1071_s16 }
 0x163   : > { %s1769_s16 = smov %s1771_s19  ;;  %16 = sbr.rel (!%p14_p0) target bundleno = 4 (0x4), region = 84 }
 0x168   :  { %757 = vsyncpa [#allocation3], 1 }
 0x169   :  { %759 = vsyncpa [#allocation3 + $0x1], 1 }

// kernel: upsampling_deconv_block.3
= control target key start
LH: loop header
LB: loop body
LE: loop exit
PB: predicated region body
PF: predicated region fallthrough
CT: control target
= control target key end

     0   :  { %8 = vsyncpa [#allocation3], 0  ;;  %s1438_s0 = inlined_call_operand.hbm [shape: f32[1024,16], index: 0, kind: input, shape index: {}]   ;;  %s1439_s1 = inlined_call_operand.vmem [shape: f32[16,128], index: 1, kind: input, shape index: {}]   ;;  %s1440_s2 = inlined_call_operand.vmem [shape: f32[1,128], index: 2, kind: input, shape index: {}]   ;;  %s1441_s3 = inlined_call_operand.vmem [shape: f32[1024,128], index: 3, kind: output, shape index: {}]  }
   0x1   :  { %10 = vsyncpa [#allocation3 + $0x1], 0  ;;  %s1076_s12 = smov 0   ;;  %s1078_s13 = smov 0  }
   0x2   :  { %s1080_s14 = smov 0   ;;  %s1082_s15 = smov 0  }
   0x3 LB: > { %s862_s16 = sadd.s32 4294967295, %s1052_s15   ;;  %s1096_s17 = sadd.s32 1, %s1052_s15   ;;  %s1052_s15 = sphi %s1082_s15, %s1448_s15   ;;  %s1048_s14 = sphi %s1080_s14, %s1447_s14   ;;  %s1044_s13 = sphi %s1078_s13, %s1446_s13   ;;  %s1040_s12 = sphi %s1076_s12, %s1445_s12  }
   0x4   : > { %s20_s18 = ssub.s32 %s1052_s15, %s1096_s17  ;;  %s23_s19 = sadd.s32 1, %s1048_s14 }
   0x5   : > { %p21_p0 = scmp.eq.s32.totalorder %s20_s18, 0  ;;  %p30_p1 = scmp.ne.s32.totalorder %s1048_s14, %s1044_s13 }
   0x6   : > { %p31_p2 = scmp.eq.s32.totalorder %s1052_s15, 0  ;;  %p36_p3 = scmp.ne.s32.totalorder %s1044_s13, %s1040_s12 }
   0x7   : > { %s1106_s20 = scalar_select %p21_p0, %s1048_s14, %s23_s19  }
   0x8   : > { %p1108_p4 = por %p31_p2, %p30_p1  ;;  %p37_p5 = scmp.eq.s32.totalorder %s862_s16, 0 }
   0x9   : > { %p952_p6 = scmp.lt.s32.totalorder %s1052_s15, 2  ;;  %s134_s23 = sand.u32 1, %s1048_s14  }
   0xa   : > { %p1115_p7 = por %p37_p5, %p36_p3  ;;  %s866_s24 = sshll.u32 %s134_s23, 9 }
   0xb   : > { %s939_s25 = sshll.u32 %s1052_s15, 9  ;;  %s138_s29 = scalar_lea.vmem [#allocation2], %s866_s24 }
   0xc   : > { %s143_s28 = scalar_lea.hbm %s1438_s0, %s939_s25  ;;  %s146_s30 = sshll.u32 %s138_s29, 4  ;;  %s147_s30 = int_to_ptr.vmem [resolvable:$true] %s146_s30 }
   0xd   : > { %s144_s4 = sshll.u32 %s143_s28, 4  ;;  %p1126_p8 = pnand %p952_p6, %p1108_p4  ;;  %s145_s4 = int_to_ptr.hbm [resolvable:$true] %s144_s4 }
   0xe   : > { %p869_p9 = scmp.ge.s32.totalorder %s1052_s15, 1  ;;  %s135_s6 = scalar_lea.sflag [#allocation3], %s134_s23 }
   0xf   : > { %s988_s7 = sshra.s32 %s145_s4, 4  ;;  %p992_p11 = pneg %p1126_p8  ;;  %s989_s7 = int_to_ptr.hbm [resolvable:$true] %s988_s7 }
  0x10   : > { %s990_s8 = scalar_lea.hbm %s989_s7, 512  ;;  %s995_s11 = scalar_lea.hbm %s1438_s0, 1024 }
  0x11   : > { %p991_p10 = scmp.ne.s32.totalorder %s989_s7, %s990_s8  ;;  %p996_p0 = scmp.lt.s32.totalorder %s989_s7, %s1438_s0 }
  0x12   : > { %p997_p1 = scmp.lt.s32.totalorder %s995_s11, %s990_s8 }
  0x13   : > { %p993_p12 = pnand %p992_p11, %p991_p10 }
  0x14   : > { %p998_p2 = por %p997_p1, %p996_p0 }
  0x15   : > { %p994_p13 = pneg %p993_p12 }
  0x17   : > { %p999_p3 = pnand %p998_p2, %p994_p13 }
  0x19   : > { %1002 = shalt.err (!%p999_p3)
}
  0x1a   : > { %s1054_s19 = smov 128   ;;  %s1055_s21 = smov 8  }
  0x1b   : > { %951 = dma.hbm_to_vmem [thread:$0]  (!%p1126_p8), %s145_s4, 8192, %s147_s30, %s135_s6, %s1054_s19, %s1054_s19, %s1055_s21  }
  0x1c   : > { %p154_p4 = scmp.lt.s32.totalorder %s1052_s15, 3 }
  0x1e   : > { %p155_p5 = pnand %p869_p9, %p154_p4 }
  0x1f   : > { %s160_s23 = sand.u32 (!%p155_p5), 1, %s1044_s13  }
  0x20   : > { %158 = sbr.rel (%p155_p5) target bundleno = 300 (0x12c), region = 32  ;;  %s870_s24 = sshll.u32 (!%p155_p5), %s160_s23, 9 }
  0x21   : > { %s161_s25 = scalar_lea.sflag (!%p155_p5), [#allocation3], %s160_s23  ;;  %s1145_s26 = scalar_lea.vmem (!%p155_p5), [#allocation2], %s870_s24 }
  0x25   : > { %1035 = dma.done.wait (%p1115_p7), %s161_s25, 8192  }
  0x26   : > { %1037 = vsyncadd (%p1115_p7), %s161_s25, 4294959104  ;;  %v260_v0 = vld [vmem:[%s1439_s1 + $0x8] sm:$0xff]  ;;  %v259_v1 = vld [vmem:[%s1439_s1] sm:$0xff]  ;;  %vm265_vm0 = vcmask 130048   ;;  %s871_s22 = sshll.u32 %s862_s16, 6 }
  0x27   : > { %941 = vmatpush.msra.mxu2 %v260_v0  ;;  %942 = vmatpush.msra.mxu3 %v260_v0  ;;  %v227_v2 = vld [vmem:[%s1145_s26 + $0x100] sm:$0xff]  ;;  %v228_v6 = vld [vmem:[%s1145_s26 + $0x108] sm:$0xff]  ;;  %v229_v10 = vld [vmem:[%s1145_s26 + $0x110] sm:$0xff]  ;;  %p190_p6 = scmp.lt.s32.totalorder %s871_s22, 127 }
  0x28   : > { %v243_v3 = vld [vmem:[%s1145_s26 + $0x180] sm:$0xff]  ;;  %472 = vmatpush.msra.mxu0 %v260_v0  ;;  %940 = vmatpush.msra.mxu1 %v260_v0  ;;  %v244_v7 = vld [vmem:[%s1145_s26 + $0x188] sm:$0xff]  ;;  %v245_v11 = vld [vmem:[%s1145_s26 + $0x190] sm:$0xff] }
  0x29   : > { %944 = vmatpush.msra.mxu2 %v259_v1  ;;  %945 = vmatpush.msra.mxu3 %v259_v1  ;;  %v195_v4 = vld [vmem:[%s1145_s26] sm:$0xff]  ;;  %v196_v8 = vld [vmem:[%s1145_s26 + $0x8] sm:$0xff]  ;;  %v197_v12 = vld [vmem:[%s1145_s26 + $0x10] sm:$0xff]  ;;  %s1450_s22 = smov (!%p190_p6, %s871_s22), 127 }
  0x2a   : > { %v211_v5 = vld [vmem:[%s1145_s26 + $0x80] sm:$0xff]  ;;  %905 = vmatmul.msk.f32.vlgmr.msra.gmra.mxu2 %vm265_vm0, %v227_v2  ;;  %921 = vmatmul.msk.f32.vlgmr.msra.gmra.mxu3 %vm265_vm0, %v243_v3  ;;  %v212_v9 = vld [vmem:[%s1145_s26 + $0x88] sm:$0xff]  ;;  %v213_v13 = vld [vmem:[%s1145_s26 + $0x90] sm:$0xff]  ;;  %s872_s15 = sshll.u32 %s1450_s22, 3 }
  0x2b   : > { %473 = vmatpush.msra.mxu0 %v259_v1  ;;  %943 = vmatpush.msra.mxu1 %v259_v1  ;;  %v230_v14 = vld [vmem:[%s1145_s26 + $0x118] sm:$0xff]  ;;  %v231_v18 = vld [vmem:[%s1145_s26 + $0x120] sm:$0xff]  ;;  %v232_v22 = vld [vmem:[%s1145_s26 + $0x128] sm:$0xff]  ;;  %s1297_s7 = scalar_lea.vmem %s1441_s3, %s872_s15 }
  0x2c   : > { %873 = vmatmul.msk.f32.vlgmr.msra.gmra.mxu0 %vm265_vm0, %v195_v4  ;;  %889 = vmatmul.msk.f32.vlgmr.msra.gmra.mxu1 %vm265_vm0, %v211_v5  ;;  %v246_v15 = vld [vmem:[%s1145_s26 + $0x198] sm:$0xff]  ;;  %v247_v19 = vld [vmem:[%s1145_s26 + $0x1a0] sm:$0xff]  ;;  %v248_v23 = vld [vmem:[%s1145_s26 + $0x1a8] sm:$0xff] }
  0x2d   : > { %v198_v16 = vld [vmem:[%s1145_s26 + $0x18] sm:$0xff]  ;;  %v199_v20 = vld [vmem:[%s1145_s26 + $0x20] sm:$0xff]  ;;  %v200_v24 = vld [vmem:[%s1145_s26 + $0x28] sm:$0xff] }
  0x2e   : > { %v214_v17 = vld [vmem:[%s1145_s26 + $0x98] sm:$0xff]  ;;  %v215_v21 = vld [vmem:[%s1145_s26 + $0xa0] sm:$0xff]  ;;  %v216_v25 = vld [vmem:[%s1145_s26 + $0xa8] sm:$0xff] }
  0x2f   : > { %v233_v26 = vld [vmem:[%s1145_s26 + $0x130] sm:$0xff]  ;;  %v234_v30 = vld [vmem:[%s1145_s26 + $0x138] sm:$0xff]  ;;  %v235_v34 = vld [vmem:[%s1145_s26 + $0x140] sm:$0xff] }
  0x30   : > { %v249_v27 = vld [vmem:[%s1145_s26 + $0x1b0] sm:$0xff]  ;;  %v250_v31 = vld [vmem:[%s1145_s26 + $0x1b8] sm:$0xff]  ;;  %v251_v35 = vld [vmem:[%s1145_s26 + $0x1c0] sm:$0xff] }
  0x31   : > { %v201_v28 = vld [vmem:[%s1145_s26 + $0x30] sm:$0xff]  ;;  %v202_v32 = vld [vmem:[%s1145_s26 + $0x38] sm:$0xff]  ;;  %v203_v36 = vld [vmem:[%s1145_s26 + $0x40] sm:$0xff] }
  0x32   : > { %906 = vmatmul.msk.f32.gmra.mxu2 %vm265_vm0, %v228_v6  ;;  %922 = vmatmul.msk.f32.gmra.mxu3 %vm265_vm0, %v244_v7  ;;  %v217_v29 = vld [vmem:[%s1145_s26 + $0xb0] sm:$0xff]  ;;  %v218_v33 = vld [vmem:[%s1145_s26 + $0xb8] sm:$0xff]  ;;  %v219_v37 = vld [vmem:[%s1145_s26 + $0xc0] sm:$0xff] }
  0x33   : > { %v236_v38 = vld [vmem:[%s1145_s26 + $0x148] sm:$0xff]  ;;  %v237_v42 = vld [vmem:[%s1145_s26 + $0x150] sm:$0xff]  ;;  %v238_v46 = vld [vmem:[%s1145_s26 + $0x158] sm:$0xff] }
  0x34   : > { %874 = vmatmul.msk.f32.gmra.mxu0 %vm265_vm0, %v196_v8  ;;  %890 = vmatmul.msk.f32.gmra.mxu1 %vm265_vm0, %v212_v9  ;;  %v252_v39 = vld [vmem:[%s1145_s26 + $0x1c8] sm:$0xff]  ;;  %v253_v43 = vld [vmem:[%s1145_s26 + $0x1d0] sm:$0xff]  ;;  %v254_v47 = vld [vmem:[%s1145_s26 + $0x1d8] sm:$0xff] }
  0x35   : > { %v204_v40 = vld [vmem:[%s1145_s26 + $0x48] sm:$0xff]  ;;  %v205_v44 = vld [vmem:[%s1145_s26 + $0x50] sm:$0xff]  ;;  %v206_v48 = vld [vmem:[%s1145_s26 + $0x58] sm:$0xff] }
  0x36   : > { %v220_v41 = vld [vmem:[%s1145_s26 + $0xc8] sm:$0xff]  ;;  %v221_v45 = vld [vmem:[%s1145_s26 + $0xd0] sm:$0xff]  ;;  %v222_v49 = vld [vmem:[%s1145_s26 + $0xd8] sm:$0xff] }
  0x37   : > { %v239_v50 = vld [vmem:[%s1145_s26 + $0x160] sm:$0xff]  ;;  %v240_v54 = vld [vmem:[%s1145_s26 + $0x168] sm:$0xff]  ;;  %v241_v58 = vld [vmem:[%s1145_s26 + $0x170] sm:$0xff] }
  0x38   : > { %v255_v51 = vld [vmem:[%s1145_s26 + $0x1e0] sm:$0xff]  ;;  %v256_v55 = vld [vmem:[%s1145_s26 + $0x1e8] sm:$0xff]  ;;  %v257_v59 = vld [vmem:[%s1145_s26 + $0x1f0] sm:$0xff] }
  0x39   : > { %v207_v52 = vld [vmem:[%s1145_s26 + $0x60] sm:$0xff]  ;;  %v208_v56 = vld [vmem:[%s1145_s26 + $0x68] sm:$0xff]  ;;  %v209_v60 = vld [vmem:[%s1145_s26 + $0x70] sm:$0xff] }
  0x3a   : > { %907 = vmatmul.msk.f32.gmra.mxu2 %vm265_vm0, %v229_v10  ;;  %923 = vmatmul.msk.f32.gmra.mxu3 %vm265_vm0, %v245_v11  ;;  %v223_v53 = vld [vmem:[%s1145_s26 + $0xe0] sm:$0xff]  ;;  %v224_v57 = vld [vmem:[%s1145_s26 + $0xe8] sm:$0xff]  ;;  %v225_v61 = vld [vmem:[%s1145_s26 + $0xf0] sm:$0xff] }
  0x3b   : > { %v242_v62 = vld [vmem:[%s1145_s26 + $0x178] sm:$0xff]  ;;  %v1290_v2 = vld [vmem:[%s1440_s2] ss:$0 sm:$0xff] }
  0x3c   : > { %875 = vmatmul.msk.f32.gmra.mxu0 %vm265_vm0, %v197_v12  ;;  %891 = vmatmul.msk.f32.gmra.mxu1 %vm265_vm0, %v213_v13  ;;  %v258_v63 = vld [vmem:[%s1145_s26 + $0x1f8] sm:$0xff] }
  0x3d   : > { %v210_v0 = vld [vmem:[%s1145_s26 + $0x78] sm:$0xff] }
  0x3e   : > { %v226_v1 = vld [vmem:[%s1145_s26 + $0xf8] sm:$0xff] }
  0x42   : > { %908 = vmatmul.msk.f32.gmra.mxu2 %vm265_vm0, %v230_v14  ;;  %924 = vmatmul.msk.f32.gmra.mxu3 %vm265_vm0, %v246_v15 }
  0x44   : > { %876 = vmatmul.msk.f32.gmra.mxu0 %vm265_vm0, %v198_v16  ;;  %892 = vmatmul.msk.f32.gmra.mxu1 %vm265_vm0, %v214_v17 }
  0x4a   : > { %909 = vmatmul.msk.f32.gmra.mxu2 %vm265_vm0, %v231_v18  ;;  %925 = vmatmul.msk.f32.gmra.mxu3 %vm265_vm0, %v247_v19 }
  0x4c   : > { %877 = vmatmul.msk.f32.gmra.mxu0 %vm265_vm0, %v199_v20  ;;  %893 = vmatmul.msk.f32.gmra.mxu1 %vm265_vm0, %v215_v21 }
  0x52   : > { %910 = vmatmul.msk.f32.gmra.mxu2 %vm265_vm0, %v232_v22  ;;  %926 = vmatmul.msk.f32.gmra.mxu3 %vm265_vm0, %v248_v23 }
  0x54   : > { %878 = vmatmul.msk.f32.gmra.mxu0 %vm265_vm0, %v200_v24  ;;  %894 = vmatmul.msk.f32.gmra.mxu1 %vm265_vm0, %v216_v25 }
  0x5a   : > { %911 = vmatmul.msk.f32.gmra.mxu2 %vm265_vm0, %v233_v26  ;;  %927 = vmatmul.msk.f32.gmra.mxu3 %vm265_vm0, %v249_v27 }
  0x5c   : > { %879 = vmatmul.msk.f32.gmra.mxu0 %vm265_vm0, %v201_v28  ;;  %895 = vmatmul.msk.f32.gmra.mxu1 %vm265_vm0, %v217_v29 }
  0x62   : > { %912 = vmatmul.msk.f32.gmra.mxu2 %vm265_vm0, %v234_v30  ;;  %928 = vmatmul.msk.f32.gmra.mxu3 %vm265_vm0, %v250_v31 }
  0x64   : > { %880 = vmatmul.msk.f32.gmra.mxu0 %vm265_vm0, %v202_v32  ;;  %896 = vmatmul.msk.f32.gmra.mxu1 %vm265_vm0, %v218_v33 }
  0x6a   : > { %913 = vmatmul.msk.f32.gmra.mxu2 %vm265_vm0, %v235_v34  ;;  %929 = vmatmul.msk.f32.gmra.mxu3 %vm265_vm0, %v251_v35 }
  0x6c   : > { %881 = vmatmul.msk.f32.gmra.mxu0 %vm265_vm0, %v203_v36  ;;  %897 = vmatmul.msk.f32.gmra.mxu1 %vm265_vm0, %v219_v37 }
  0x72   : > { %914 = vmatmul.msk.f32.gmra.mxu2 %vm265_vm0, %v236_v38  ;;  %930 = vmatmul.msk.f32.gmra.mxu3 %vm265_vm0, %v252_v39 }
  0x74   : > { %882 = vmatmul.msk.f32.gmra.mxu0 %vm265_vm0, %v204_v40  ;;  %898 = vmatmul.msk.f32.gmra.mxu1 %vm265_vm0, %v220_v41 }
  0x7a   : > { %915 = vmatmul.msk.f32.gmra.mxu2 %vm265_vm0, %v237_v42  ;;  %931 = vmatmul.msk.f32.gmra.mxu3 %vm265_vm0, %v253_v43 }
  0x7c   : > { %883 = vmatmul.msk.f32.gmra.mxu0 %vm265_vm0, %v205_v44  ;;  %899 = vmatmul.msk.f32.gmra.mxu1 %vm265_vm0, %v221_v45 }
  0x82   : > { %916 = vmatmul.msk.f32.gmra.mxu2 %vm265_vm0, %v238_v46  ;;  %932 = vmatmul.msk.f32.gmra.mxu3 %vm265_vm0, %v254_v47 }
  0x84   : > { %884 = vmatmul.msk.f32.gmra.mxu0 %vm265_vm0, %v206_v48  ;;  %900 = vmatmul.msk.f32.gmra.mxu1 %vm265_vm0, %v222_v49 }
  0x8a   : > { %917 = vmatmul.msk.f32.gmra.mxu2 %vm265_vm0, %v239_v50  ;;  %933 = vmatmul.msk.f32.gmra.mxu3 %vm265_vm0, %v255_v51 }
  0x8c   : > { %885 = vmatmul.msk.f32.gmra.mxu0 %vm265_vm0, %v207_v52  ;;  %901 = vmatmul.msk.f32.gmra.mxu1 %vm265_vm0, %v223_v53 }
  0x92   : > { %918 = vmatmul.msk.f32.gmra.mxu2 %vm265_vm0, %v240_v54  ;;  %934 = vmatmul.msk.f32.gmra.mxu3 %vm265_vm0, %v256_v55 }
  0x94   : > { %886 = vmatmul.msk.f32.gmra.mxu0 %vm265_vm0, %v208_v56  ;;  %902 = vmatmul.msk.f32.gmra.mxu1 %vm265_vm0, %v224_v57 }
  0x9a   : > { %919 = vmatmul.msk.f32.gmra.mxu2 %vm265_vm0, %v241_v58  ;;  %935 = vmatmul.msk.f32.gmra.mxu3 %vm265_vm0, %v257_v59 }
  0x9c   : > { %887 = vmatmul.msk.f32.gmra.mxu0 %vm265_vm0, %v209_v60  ;;  %903 = vmatmul.msk.f32.gmra.mxu1 %vm265_vm0, %v225_v61 }
  0xa2   : > { %920 = vmatmul.msk.f32.gmra.mxu2 %vm265_vm0, %v242_v62  ;;  %936 = vmatmul.msk.f32.gmra.mxu3 %vm265_vm0, %v258_v63 }
  0xa4   : > { %888 = vmatmul.msk.f32.gmra.mxu0 %vm265_vm0, %v210_v0  ;;  %904 = vmatmul.msk.f32.gmra.mxu1 %vm265_vm0, %v226_v1 }
  0xa9   : > { %v475_v3 = vpop.f32.mrf.mxu0  ;;  %v523_v4 = vpop.f32.mrf.mxu1 }
  0xaa   : > { %v476_v5 = vadd.f32 %v1290_v2, %v475_v3  ;;  %v524_v6 = vadd.f32 %v1290_v2, %v523_v4 }
  0xac   : > { %v667_v7 = vmax.f32 %v476_v5, 0.0  ;;  %v683_v8 = vmax.f32 %v524_v6, 0.0 }
  0xad   : > { %v571_v9 = vpop.f32.mrf.mxu2  ;;  %v619_v10 = vpop.f32.mrf.mxu3 }
  0xae   : > { %731 = vst [vmem:[%s1297_s7] sm:$0xff] %v667_v7  ;;  %v572_v11 = vadd.f32 %v1290_v2, %v571_v9  ;;  %v620_v12 = vadd.f32 %v1290_v2, %v619_v10 }
  0xaf   : > { %747 = vst [vmem:[%s1297_s7 + $0x80] sm:$0xff] %v683_v8 }
  0xb0   : > { %v699_v13 = vmax.f32 %v572_v11, 0.0  ;;  %v715_v14 = vmax.f32 %v620_v12, 0.0 }
  0xb1   : > { %v478_v15 = vpop.f32.mrf.mxu0  ;;  %v526_v16 = vpop.f32.mrf.mxu1 }
  0xb2   : > { %763 = vst [vmem:[%s1297_s7 + $0x100] sm:$0xff] %v699_v13  ;;  %v479_v17 = vadd.f32 %v1290_v2, %v478_v15  ;;  %v527_v18 = vadd.f32 %v1290_v2, %v526_v16 }
  0xb3   : > { %779 = vst [vmem:[%s1297_s7 + $0x180] sm:$0xff] %v715_v14 }
  0xb4   : > { %v668_v19 = vmax.f32 %v479_v17, 0.0  ;;  %v684_v20 = vmax.f32 %v527_v18, 0.0 }
  0xb5   : > { %v574_v21 = vpop.f32.mrf.mxu2  ;;  %v622_v22 = vpop.f32.mrf.mxu3 }
  0xb6   : > { %732 = vst [vmem:[%s1297_s7 + $0x8] sm:$0xff] %v668_v19  ;;  %v575_v23 = vadd.f32 %v1290_v2, %v574_v21  ;;  %v623_v24 = vadd.f32 %v1290_v2, %v622_v22 }
  0xb7   : > { %748 = vst [vmem:[%s1297_s7 + $0x88] sm:$0xff] %v684_v20 }
  0xb8   : > { %v700_v25 = vmax.f32 %v575_v23, 0.0  ;;  %v716_v26 = vmax.f32 %v623_v24, 0.0 }
  0xb9   : > { %v481_v27 = vpop.f32.mrf.mxu0  ;;  %v529_v28 = vpop.f32.mrf.mxu1 }
  0xba   : > { %764 = vst [vmem:[%s1297_s7 + $0x108] sm:$0xff] %v700_v25  ;;  %v482_v29 = vadd.f32 %v1290_v2, %v481_v27  ;;  %v530_v30 = vadd.f32 %v1290_v2, %v529_v28 }
  0xbb   : > { %780 = vst [vmem:[%s1297_s7 + $0x188] sm:$0xff] %v716_v26 }
  0xbc   : > { %v669_v31 = vmax.f32 %v482_v29, 0.0  ;;  %v685_v32 = vmax.f32 %v530_v30, 0.0 }
  0xbd   : > { %v577_v33 = vpop.f32.mrf.mxu2  ;;  %v625_v34 = vpop.f32.mrf.mxu3 }
  0xbe   : > { %733 = vst [vmem:[%s1297_s7 + $0x10] sm:$0xff] %v669_v31  ;;  %v578_v35 = vadd.f32 %v1290_v2, %v577_v33  ;;  %v626_v36 = vadd.f32 %v1290_v2, %v625_v34 }
  0xbf   : > { %749 = vst [vmem:[%s1297_s7 + $0x90] sm:$0xff] %v685_v32 }
  0xc0   : > { %v701_v37 = vmax.f32 %v578_v35, 0.0  ;;  %v717_v38 = vmax.f32 %v626_v36, 0.0 }
  0xc1   : > { %v484_v39 = vpop.f32.mrf.mxu0  ;;  %v532_v40 = vpop.f32.mrf.mxu1 }
  0xc2   : > { %765 = vst [vmem:[%s1297_s7 + $0x110] sm:$0xff] %v701_v37  ;;  %v485_v41 = vadd.f32 %v1290_v2, %v484_v39  ;;  %v533_v42 = vadd.f32 %v1290_v2, %v532_v40 }
  0xc3   : > { %781 = vst [vmem:[%s1297_s7 + $0x190] sm:$0xff] %v717_v38 }
  0xc4   : > { %v670_v43 = vmax.f32 %v485_v41, 0.0  ;;  %v686_v44 = vmax.f32 %v533_v42, 0.0 }
  0xc5   : > { %v580_v45 = vpop.f32.mrf.mxu2  ;;  %v628_v46 = vpop.f32.mrf.mxu3 }
  0xc6   : > { %734 = vst [vmem:[%s1297_s7 + $0x18] sm:$0xff] %v670_v43  ;;  %v581_v47 = vadd.f32 %v1290_v2, %v580_v45  ;;  %v629_v48 = vadd.f32 %v1290_v2, %v628_v46 }
  0xc7   : > { %750 = vst [vmem:[%s1297_s7 + $0x98] sm:$0xff] %v686_v44 }
  0xc8   : > { %v702_v49 = vmax.f32 %v581_v47, 0.0  ;;  %v718_v50 = vmax.f32 %v629_v48, 0.0 }
  0xc9   : > { %v487_v51 = vpop.f32.mrf.mxu0  ;;  %v535_v52 = vpop.f32.mrf.mxu1 }
  0xca   : > { %766 = vst [vmem:[%s1297_s7 + $0x118] sm:$0xff] %v702_v49  ;;  %v488_v53 = vadd.f32 %v1290_v2, %v487_v51  ;;  %v536_v54 = vadd.f32 %v1290_v2, %v535_v52 }
  0xcb   : > { %782 = vst [vmem:[%s1297_s7 + $0x198] sm:$0xff] %v718_v50 }
  0xcc   : > { %v671_v55 = vmax.f32 %v488_v53, 0.0  ;;  %v687_v56 = vmax.f32 %v536_v54, 0.0 }
  0xcd   : > { %v583_v57 = vpop.f32.mrf.mxu2  ;;  %v631_v58 = vpop.f32.mrf.mxu3 }
  0xce   : > { %735 = vst [vmem:[%s1297_s7 + $0x20] sm:$0xff] %v671_v55  ;;  %v584_v59 = vadd.f32 %v1290_v2, %v583_v57  ;;  %v632_v60 = vadd.f32 %v1290_v2, %v631_v58 }
  0xcf   : > { %751 = vst [vmem:[%s1297_s7 + $0xa0] sm:$0xff] %v687_v56 }
  0xd0   : > { %v703_v61 = vmax.f32 %v584_v59, 0.0  ;;  %v719_v62 = vmax.f32 %v632_v60, 0.0 }
  0xd1   : > { %v490_v63 = vpop.f32.mrf.mxu0  ;;  %v538_v0 = vpop.f32.mrf.mxu1 }
  0xd2   : > { %767 = vst [vmem:[%s1297_s7 + $0x120] sm:$0xff] %v703_v61  ;;  %v491_v1 = vadd.f32 %v1290_v2, %v490_v63  ;;  %v539_v3 = vadd.f32 %v1290_v2, %v538_v0 }
  0xd3   : > { %783 = vst [vmem:[%s1297_s7 + $0x1a0] sm:$0xff] %v719_v62 }
  0xd4   : > { %v672_v4 = vmax.f32 %v491_v1, 0.0  ;;  %v688_v5 = vmax.f32 %v539_v3, 0.0 }
  0xd5   : > { %v586_v6 = vpop.f32.mrf.mxu2  ;;  %v634_v7 = vpop.f32.mrf.mxu3 }
  0xd6   : > { %736 = vst [vmem:[%s1297_s7 + $0x28] sm:$0xff] %v672_v4  ;;  %v587_v8 = vadd.f32 %v1290_v2, %v586_v6  ;;  %v635_v9 = vadd.f32 %v1290_v2, %v634_v7 }
  0xd7   : > { %752 = vst [vmem:[%s1297_s7 + $0xa8] sm:$0xff] %v688_v5 }
  0xd8   : > { %v704_v10 = vmax.f32 %v587_v8, 0.0  ;;  %v720_v11 = vmax.f32 %v635_v9, 0.0 }
  0xd9   : > { %v493_v12 = vpop.f32.mrf.mxu0  ;;  %v541_v13 = vpop.f32.mrf.mxu1 }
  0xda   : > { %768 = vst [vmem:[%s1297_s7 + $0x128] sm:$0xff] %v704_v10  ;;  %v494_v14 = vadd.f32 %v1290_v2, %v493_v12  ;;  %v542_v15 = vadd.f32 %v1290_v2, %v541_v13 }
  0xdb   : > { %784 = vst [vmem:[%s1297_s7 + $0x1a8] sm:$0xff] %v720_v11 }
  0xdc   : > { %v673_v16 = vmax.f32 %v494_v14, 0.0  ;;  %v689_v17 = vmax.f32 %v542_v15, 0.0 }
  0xdd   : > { %v589_v18 = vpop.f32.mrf.mxu2  ;;  %v637_v19 = vpop.f32.mrf.mxu3 }
  0xde   : > { %737 = vst [vmem:[%s1297_s7 + $0x30] sm:$0xff] %v673_v16  ;;  %v590_v20 = vadd.f32 %v1290_v2, %v589_v18  ;;  %v638_v21 = vadd.f32 %v1290_v2, %v637_v19 }
  0xdf   : > { %753 = vst [vmem:[%s1297_s7 + $0xb0] sm:$0xff] %v689_v17 }
  0xe0   : > { %v705_v22 = vmax.f32 %v590_v20, 0.0  ;;  %v721_v23 = vmax.f32 %v638_v21, 0.0 }
  0xe1   : > { %v496_v24 = vpop.f32.mrf.mxu0  ;;  %v544_v25 = vpop.f32.mrf.mxu1 }
  0xe2   : > { %769 = vst [vmem:[%s1297_s7 + $0x130] sm:$0xff] %v705_v22  ;;  %v497_v26 = vadd.f32 %v1290_v2, %v496_v24  ;;  %v545_v27 = vadd.f32 %v1290_v2, %v544_v25 }
  0xe3   : > { %785 = vst [vmem:[%s1297_s7 + $0x1b0] sm:$0xff] %v721_v23 }
  0xe4   : > { %v674_v28 = vmax.f32 %v497_v26, 0.0  ;;  %v690_v29 = vmax.f32 %v545_v27, 0.0 }
  0xe5   : > { %v592_v30 = vpop.f32.mrf.mxu2  ;;  %v640_v31 = vpop.f32.mrf.mxu3 }
  0xe6   : > { %738 = vst [vmem:[%s1297_s7 + $0x38] sm:$0xff] %v674_v28  ;;  %v593_v32 = vadd.f32 %v1290_v2, %v592_v30  ;;  %v641_v33 = vadd.f32 %v1290_v2, %v640_v31 }
  0xe7   : > { %754 = vst [vmem:[%s1297_s7 + $0xb8] sm:$0xff] %v690_v29 }
  0xe8   : > { %v706_v34 = vmax.f32 %v593_v32, 0.0  ;;  %v722_v35 = vmax.f32 %v641_v33, 0.0 }
  0xe9   : > { %v499_v36 = vpop.f32.mrf.mxu0  ;;  %v547_v37 = vpop.f32.mrf.mxu1 }
  0xea   : > { %770 = vst [vmem:[%s1297_s7 + $0x138] sm:$0xff] %v706_v34  ;;  %v500_v38 = vadd.f32 %v1290_v2, %v499_v36  ;;  %v548_v39 = vadd.f32 %v1290_v2, %v547_v37 }
  0xeb   : > { %786 = vst [vmem:[%s1297_s7 + $0x1b8] sm:$0xff] %v722_v35 }
  0xec   : > { %v675_v40 = vmax.f32 %v500_v38, 0.0  ;;  %v691_v41 = vmax.f32 %v548_v39, 0.0 }
  0xed   : > { %v595_v42 = vpop.f32.mrf.mxu2  ;;  %v643_v43 = vpop.f32.mrf.mxu3 }
  0xee   : > { %739 = vst [vmem:[%s1297_s7 + $0x40] sm:$0xff] %v675_v40  ;;  %v596_v44 = vadd.f32 %v1290_v2, %v595_v42  ;;  %v644_v45 = vadd.f32 %v1290_v2, %v643_v43 }
  0xef   : > { %755 = vst [vmem:[%s1297_s7 + $0xc0] sm:$0xff] %v691_v41 }
  0xf0   : > { %v707_v46 = vmax.f32 %v596_v44, 0.0  ;;  %v723_v47 = vmax.f32 %v644_v45, 0.0 }
  0xf1   : > { %v502_v48 = vpop.f32.mrf.mxu0  ;;  %v550_v49 = vpop.f32.mrf.mxu1 }
  0xf2   : > { %771 = vst [vmem:[%s1297_s7 + $0x140] sm:$0xff] %v707_v46  ;;  %v503_v50 = vadd.f32 %v1290_v2, %v502_v48  ;;  %v551_v51 = vadd.f32 %v1290_v2, %v550_v49 }
  0xf3   : > { %787 = vst [vmem:[%s1297_s7 + $0x1c0] sm:$0xff] %v723_v47 }
  0xf4   : > { %v676_v52 = vmax.f32 %v503_v50, 0.0  ;;  %v692_v53 = vmax.f32 %v551_v51, 0.0 }
  0xf5   : > { %v598_v54 = vpop.f32.mrf.mxu2  ;;  %v646_v55 = vpop.f32.mrf.mxu3 }
  0xf6   : > { %740 = vst [vmem:[%s1297_s7 + $0x48] sm:$0xff] %v676_v52  ;;  %v599_v56 = vadd.f32 %v1290_v2, %v598_v54  ;;  %v647_v57 = vadd.f32 %v1290_v2, %v646_v55 }
  0xf7   : > { %756 = vst [vmem:[%s1297_s7 + $0xc8] sm:$0xff] %v692_v53 }
  0xf8   : > { %v708_v58 = vmax.f32 %v599_v56, 0.0  ;;  %v724_v59 = vmax.f32 %v647_v57, 0.0 }
  0xf9   : > { %v505_v60 = vpop.f32.mrf.mxu0  ;;  %v553_v61 = vpop.f32.mrf.mxu1 }
  0xfa   : > { %772 = vst [vmem:[%s1297_s7 + $0x148] sm:$0xff] %v708_v58  ;;  %v506_v62 = vadd.f32 %v1290_v2, %v505_v60  ;;  %v554_v63 = vadd.f32 %v1290_v2, %v553_v61 }
  0xfb   : > { %788 = vst [vmem:[%s1297_s7 + $0x1c8] sm:$0xff] %v724_v59 }
  0xfc   : > { %v677_v0 = vmax.f32 %v506_v62, 0.0  ;;  %v693_v1 = vmax.f32 %v554_v63, 0.0 }
  0xfd   : > { %v601_v3 = vpop.f32.mrf.mxu2  ;;  %v649_v4 = vpop.f32.mrf.mxu3 }
  0xfe   : > { %741 = vst [vmem:[%s1297_s7 + $0x50] sm:$0xff] %v677_v0  ;;  %v602_v5 = vadd.f32 %v1290_v2, %v601_v3  ;;  %v650_v6 = vadd.f32 %v1290_v2, %v649_v4 }
  0xff   : > { %757 = vst [vmem:[%s1297_s7 + $0xd0] sm:$0xff] %v693_v1 }
 0x100   : > { %v709_v7 = vmax.f32 %v602_v5, 0.0  ;;  %v725_v8 = vmax.f32 %v650_v6, 0.0 }
 0x101   : > { %v508_v9 = vpop.f32.mrf.mxu0  ;;  %v556_v10 = vpop.f32.mrf.mxu1 }
 0x102   : > { %773 = vst [vmem:[%s1297_s7 + $0x150] sm:$0xff] %v709_v7  ;;  %v509_v11 = vadd.f32 %v1290_v2, %v508_v9  ;;  %v557_v12 = vadd.f32 %v1290_v2, %v556_v10 }
 0x103   : > { %789 = vst [vmem:[%s1297_s7 + $0x1d0] sm:$0xff] %v725_v8 }
 0x104   : > { %v678_v13 = vmax.f32 %v509_v11, 0.0  ;;  %v694_v14 = vmax.f32 %v557_v12, 0.0 }
 0x105   : > { %v604_v15 = vpop.f32.mrf.mxu2  ;;  %v652_v16 = vpop.f32.mrf.mxu3 }
 0x106   : > { %742 = vst [vmem:[%s1297_s7 + $0x58] sm:$0xff] %v678_v13  ;;  %v605_v17 = vadd.f32 %v1290_v2, %v604_v15  ;;  %v653_v18 = vadd.f32 %v1290_v2, %v652_v16 }
 0x107   : > { %758 = vst [vmem:[%s1297_s7 + $0xd8] sm:$0xff] %v694_v14 }
 0x108   : > { %v710_v19 = vmax.f32 %v605_v17, 0.0  ;;  %v726_v20 = vmax.f32 %v653_v18, 0.0 }
 0x109   : > { %v511_v21 = vpop.f32.mrf.mxu0  ;;  %v559_v22 = vpop.f32.mrf.mxu1 }
 0x10a   : > { %774 = vst [vmem:[%s1297_s7 + $0x158] sm:$0xff] %v710_v19  ;;  %v512_v23 = vadd.f32 %v1290_v2, %v511_v21  ;;  %v560_v24 = vadd.f32 %v1290_v2, %v559_v22 }
 0x10b   : > { %790 = vst [vmem:[%s1297_s7 + $0x1d8] sm:$0xff] %v726_v20 }
 0x10c   : > { %v679_v25 = vmax.f32 %v512_v23, 0.0  ;;  %v695_v26 = vmax.f32 %v560_v24, 0.0 }
 0x10d   : > { %v607_v27 = vpop.f32.mrf.mxu2  ;;  %v655_v28 = vpop.f32.mrf.mxu3 }
 0x10e   : > { %743 = vst [vmem:[%s1297_s7 + $0x60] sm:$0xff] %v679_v25  ;;  %v608_v29 = vadd.f32 %v1290_v2, %v607_v27  ;;  %v656_v30 = vadd.f32 %v1290_v2, %v655_v28 }
 0x10f   : > { %759 = vst [vmem:[%s1297_s7 + $0xe0] sm:$0xff] %v695_v26 }
 0x110   : > { %v711_v31 = vmax.f32 %v608_v29, 0.0  ;;  %v727_v32 = vmax.f32 %v656_v30, 0.0 }
 0x111   : > { %v514_v33 = vpop.f32.mrf.mxu0  ;;  %v562_v34 = vpop.f32.mrf.mxu1 }
 0x112   : > { %775 = vst [vmem:[%s1297_s7 + $0x160] sm:$0xff] %v711_v31  ;;  %v515_v35 = vadd.f32 %v1290_v2, %v514_v33  ;;  %v563_v36 = vadd.f32 %v1290_v2, %v562_v34 }
 0x113   : > { %791 = vst [vmem:[%s1297_s7 + $0x1e0] sm:$0xff] %v727_v32 }
 0x114   : > { %v680_v37 = vmax.f32 %v515_v35, 0.0  ;;  %v696_v38 = vmax.f32 %v563_v36, 0.0 }
 0x115   : > { %v610_v39 = vpop.f32.mrf.mxu2  ;;  %v658_v40 = vpop.f32.mrf.mxu3 }
 0x116   : > { %744 = vst [vmem:[%s1297_s7 + $0x68] sm:$0xff] %v680_v37  ;;  %v611_v41 = vadd.f32 %v1290_v2, %v610_v39  ;;  %v659_v42 = vadd.f32 %v1290_v2, %v658_v40 }
 0x117   : > { %760 = vst [vmem:[%s1297_s7 + $0xe8] sm:$0xff] %v696_v38 }
 0x118   : > { %v712_v43 = vmax.f32 %v611_v41, 0.0  ;;  %v728_v44 = vmax.f32 %v659_v42, 0.0 }
 0x119   : > { %v517_v45 = vpop.f32.mrf.mxu0  ;;  %v565_v46 = vpop.f32.mrf.mxu1 }
 0x11a   : > { %776 = vst [vmem:[%s1297_s7 + $0x168] sm:$0xff] %v712_v43  ;;  %v518_v47 = vadd.f32 %v1290_v2, %v517_v45  ;;  %v566_v48 = vadd.f32 %v1290_v2, %v565_v46 }
 0x11b   : > { %792 = vst [vmem:[%s1297_s7 + $0x1e8] sm:$0xff] %v728_v44 }
 0x11c   : > { %v681_v49 = vmax.f32 %v518_v47, 0.0  ;;  %v697_v50 = vmax.f32 %v566_v48, 0.0 }
 0x11d   : > { %v613_v51 = vpop.f32.mrf.mxu2  ;;  %v661_v52 = vpop.f32.mrf.mxu3 }
 0x11e   : > { %745 = vst [vmem:[%s1297_s7 + $0x70] sm:$0xff] %v681_v49  ;;  %v614_v53 = vadd.f32 %v1290_v2, %v613_v51  ;;  %v662_v54 = vadd.f32 %v1290_v2, %v661_v52 }
 0x11f   : > { %761 = vst [vmem:[%s1297_s7 + $0xf0] sm:$0xff] %v697_v50 }
 0x120   : > { %v713_v55 = vmax.f32 %v614_v53, 0.0  ;;  %v729_v56 = vmax.f32 %v662_v54, 0.0 }
 0x121   : > { %v520_v57 = vpop.f32.mrf.mxu0  ;;  %v568_v58 = vpop.f32.mrf.mxu1 }
 0x122   : > { %777 = vst [vmem:[%s1297_s7 + $0x170] sm:$0xff] %v713_v55  ;;  %v521_v59 = vadd.f32 %v1290_v2, %v520_v57  ;;  %v569_v60 = vadd.f32 %v1290_v2, %v568_v58 }
 0x123   : > { %793 = vst [vmem:[%s1297_s7 + $0x1f0] sm:$0xff] %v729_v56 }
 0x124   : > { %v682_v61 = vmax.f32 %v521_v59, 0.0  ;;  %v698_v62 = vmax.f32 %v569_v60, 0.0 }
 0x125   : > { %v616_v63 = vpop.f32.mrf.mxu2  ;;  %v664_v0 = vpop.f32.mrf.mxu3 }
 0x126   : > { %746 = vst [vmem:[%s1297_s7 + $0x78] sm:$0xff] %v682_v61  ;;  %v617_v1 = vadd.f32 %v1290_v2, %v616_v63  ;;  %v665_v3 = vadd.f32 %v1290_v2, %v664_v0 }
 0x127   : > { %762 = vst [vmem:[%s1297_s7 + $0xf8] sm:$0xff] %v698_v62 }
 0x128   : > { %v714_v4 = vmax.f32 %v617_v1, 0.0  ;;  %v730_v5 = vmax.f32 %v665_v3, 0.0 }
 0x12a   : > { %778 = vst [vmem:[%s1297_s7 + $0x178] sm:$0xff] %v714_v4 }
 0x12b   : > { %794 = vst [vmem:[%s1297_s7 + $0x1f8] sm:$0xff] %v730_v5 }
 0x12c PF: > { %p13_p7 = scmp.ge.s32.totalorder %s1096_s17, 4   ;;  %s1445_s12 = smov %s1044_s13 }
 0x12d   : > { %s1446_s13 = smov %s1048_s14  ;;  %s1447_s14 = smov %s1106_s20 }
 0x12e   : > { %s1448_s15 = smov %s1096_s17  ;;  %15 = sbr.rel (!%p13_p7) target bundleno = 3 (0x3), region = 72 }
 0x133   :  { %817 = vsyncpa [#allocation3], 1 }
 0x134   :  { %819 = vsyncpa [#allocation3 + $0x1], 1 }

</bundles_post_ra>
